<compile_context>
chip_gen: v6e
topology: v6e:2x2x1
jax: 0.10.0
libtpu: 0.0.40
codegen_flags: <defaults>
</compile_context>

<pallas_src>
import functools
import math

import jax
import jax.numpy as jnp
import numpy as np
from jax.experimental import pallas as pl
from jax.experimental.pallas import tpu as pltpu


# ---------------------------------------------------------------------------
# Fused kernel: entire GCN forward for one batch-half, resident in VMEM.
# Activations are packed as (N, B_half*F) slabs (column index = batch*F + feature).
# ---------------------------------------------------------------------------
def _gcn_fused_kernel(x_ref, g1w_ref, g1a_ref, g1sc_ref, g1sh_ref,
                      bw_ref, ba_ref, bsc_ref, bsh_ref, *rest,
                      num_stage, apply_gc7):
    if apply_gc7:
        g7w_ref, g7a_ref, g7b_ref, out_ref = rest
    else:
        (out_ref,) = rest

    bf16 = jnp.bfloat16
    x = x_ref[...]                                             # (N, BH*F_in) f32

    # --- gc1 + bn1 + tanh  (Dropout = identity in eval) ---------------------
    # associativity: (att @ x) @ W_bd keeps the intermediate at the narrow F_in width
    ax = jnp.dot(g1a_ref[...], x.astype(bf16),
                 preferred_element_type=jnp.float32)           # (N, BH*F_in)
    s = jnp.dot(ax.astype(bf16), g1w_ref[...],
                preferred_element_type=jnp.float32)            # (N, BH*H)
    y = jnp.tanh(s * g1sc_ref[...] + g1sh_ref[...])            # f32 BN affine + tanh

    # --- num_stage residual GC_Blocks (2 x (GC + BN + tanh) each) -----------
    def gc_bn_tanh(v, layer):
        s = jnp.dot(v.astype(bf16), bw_ref[layer],
                    preferred_element_type=jnp.float32)        # per-batch  v @ W
        z = jnp.dot(ba_ref[layer], s.astype(bf16),
                    preferred_element_type=jnp.float32)        # att @ support (lane dense)
        return jnp.tanh(z * bsc_ref[layer] + bsh_ref[layer])

    for stage in range(num_stage):
        z = gc_bn_tanh(y, 2 * stage)
        y = gc_bn_tanh(z, 2 * stage + 1) + y                   # residual inside the block

    # --- gc7 (plain GraphConvolution) + input residual ----------------------
    if apply_gc7:
        s = jnp.dot(y.astype(bf16), g7w_ref[...],
                    preferred_element_type=jnp.float32)        # (N, BH*F_in)
        o = jnp.dot(g7a_ref[...], s.astype(bf16),
                    preferred_element_type=jnp.float32)
        y = o + g7b_ref[...] + x

    out_ref[...] = y.astype(out_ref.dtype)


# ---------------------------------------------------------------------------
# One-time parameter packing (hoisted out of the per-forward path).
# ---------------------------------------------------------------------------
def pack_gcn_params(params, batch):
    assert batch % 2 == 0, "batch must be even (2-way 'parallel' grid over batch halves)"
    bh = batch // 2

    def kron_bd(w):
        # per-batch-half block-diagonal weight; bf16 halves weight DMA bytes
        return jnp.kron(jnp.eye(bh, dtype=w.dtype), w).astype(jnp.bfloat16)

    def fold_bn(gc, bn):
        # eval BatchNorm affine, with the GraphConvolution bias folded into the shift
        scale = jnp.tile(bn["scale"], (1, bh)).astype(jnp.float32)            # (N, bh*F)
        shift = jnp.tile(gc["b"][None, :] * bn["scale"] + bn["shift"],
                         (1, bh)).astype(jnp.float32)
        return scale, shift

    g1sc, g1sh = fold_bn(params["gc1"], params["bn1"])
    packed = {
        "batch": batch,
        "gc1_w": kron_bd(params["gc1"]["w"]),
        "gc1_att": params["gc1"]["att"].astype(jnp.bfloat16),
        "gc1_scale": g1sc,
        "gc1_shift": g1sh,
    }

    blk_w, blk_att, blk_sc, blk_sh = [], [], [], []
    for blk in params["gcbs"]:
        for gc_name, bn_name in (("gc1", "bn1"), ("gc2", "bn2")):
            sc, sh = fold_bn(blk[gc_name], blk[bn_name])
            blk_w.append(kron_bd(blk[gc_name]["w"]))
            blk_att.append(blk[gc_name]["att"].astype(jnp.bfloat16))
            blk_sc.append(sc)
            blk_sh.append(sh)
    packed["blk_w"] = jnp.stack(blk_w)          # (L, bh*H, bh*H)
    packed["blk_att"] = jnp.stack(blk_att)      # (L, N, N)
    packed["blk_scale"] = jnp.stack(blk_sc)     # (L, N, bh*H)
    packed["blk_shift"] = jnp.stack(blk_sh)     # (L, N, bh*H)

    gc7 = params["gc7"]
    packed["gc7_w"] = kron_bd(gc7["w"])
    packed["gc7_att"] = gc7["att"].astype(jnp.bfloat16)
    packed["gc7_bias"] = jnp.tile(gc7["b"], (bh,)).reshape(1, -1).astype(jnp.float32)
    return packed


# ---------------------------------------------------------------------------
# Forward wrapper: packs the activations and launches ONE fused pallas_call.
# ---------------------------------------------------------------------------
def gcn_forward(x, packed, is_output=False):
    b, n, f_in = x.shape
    assert b == packed["batch"]
    bh = b // 2
    hf_in = bh * f_in
    assert packed["gc1_w"].shape[0] == hf_in, "packed params don't match x feature dim"
    hh = packed["gc1_w"].shape[1]               # bh * hidden
    num_stage = packed["blk_w"].shape[0] // 2
    apply_gc7 = not is_output
    hf_out = hf_in if apply_gc7 else hh
    f_out = f_in if apply_gc7 else hh // bh

    # (B, N, F) -> packed (N, B*F): nodes on sublanes, batch*feature on lanes.
    x_packed = jnp.transpose(x, (1, 0, 2)).reshape(n, b * f_in)

    def full(a):
        return pl.BlockSpec(a.shape, lambda h, nd=a.ndim: (0,) * nd)

    in_specs = [
        pl.BlockSpec((n, hf_in), lambda h: (0, h)),   # per-half lane slice of the input
        full(packed["gc1_w"]), full(packed["gc1_att"]),
        full(packed["gc1_scale"]), full(packed["gc1_shift"]),
        full(packed["blk_w"]), full(packed["blk_att"]),
        full(packed["blk_scale"]), full(packed["blk_shift"]),
    ]
    inputs = [x_packed,
              packed["gc1_w"], packed["gc1_att"], packed["gc1_scale"], packed["gc1_shift"],
              packed["blk_w"], packed["blk_att"], packed["blk_scale"], packed["blk_shift"]]
    if apply_gc7:
        in_specs += [full(packed["gc7_w"]), full(packed["gc7_att"]), full(packed["gc7_bias"])]
        inputs += [packed["gc7_w"], packed["gc7_att"], packed["gc7_bias"]]

    # Advisory cost estimate (executed MXU flops, incl. block-diagonal zeros), 2 halves.
    L = 2 * num_stage
    flops_half = (2 * n * n * hf_in + 2 * n * hf_in * hh
                  + L * (2 * n * hh * hh + 2 * n * n * hh))
    trans_half = (1 + L) * n * hh
    if apply_gc7:
        flops_half += 2 * n * hh * hf_in + 2 * n * n * hf_in
    bytes_accessed = sum(int(np.prod(a.shape)) * a.dtype.itemsize for a in inputs)
    bytes_accessed += n * b * f_out * 4

    kernel = functools.partial(_gcn_fused_kernel,
                               num_stage=num_stage, apply_gc7=apply_gc7)
    out_packed = pl.pallas_call(
        kernel,
        grid=(2,),
        in_specs=in_specs,
        out_specs=pl.BlockSpec((n, hf_out), lambda h: (0, h)),
        out_shape=jax.ShapeDtypeStruct((n, b * f_out), x.dtype),
        compiler_params=pltpu.CompilerParams(dimension_semantics=("parallel",)),
        cost_estimate=pl.CostEstimate(flops=2 * flops_half,
                                      transcendentals=2 * trans_half,
                                      bytes_accessed=bytes_accessed),
    )(*inputs)

    return jnp.transpose(out_packed.reshape(n, b, f_out), (1, 0, 2))


# ---------------------------------------------------------------------------
# Parameter construction (deterministic), mirroring the PyTorch __init__.
# ---------------------------------------------------------------------------
def _init_gc(key, in_features, out_features, node_n):
    stdv = 1.0 / math.sqrt(out_features)
    k1, k2, k3 = jax.random.split(key, 3)
    w = jax.random.uniform(k1, (in_features, out_features), jnp.float32, -stdv, stdv)
    att = jax.random.uniform(k2, (node_n, node_n), jnp.float32, -stdv, stdv)
    b = jax.random.uniform(k3, (out_features,), jnp.float32, -stdv, stdv)
    return {"w": w, "att": att, "b": b}


def _init_bn(node_n, features, eps=1e-5):
    # BatchNorm1d(node_n*features) at init: gamma=1, beta=0, mean=0, var=1 (eval mode).
    size = node_n * features
    gamma = jnp.ones((size,), jnp.float32)
    beta = jnp.zeros((size,), jnp.float32)
    running_mean = jnp.zeros((size,), jnp.float32)
    running_var = jnp.ones((size,), jnp.float32)
    inv = gamma / jnp.sqrt(running_var + eps)
    scale = inv.reshape(node_n, features)
    shift = (beta - running_mean * inv).reshape(node_n, features)
    return {"scale": scale, "shift": shift}


def init_gcn_params(key, input_feature, hidden_feature, num_stage, node_n):
    keys = jax.random.split(key, 2 + 4 * num_stage)
    params = {
        "gc1": _init_gc(keys[0], input_feature, hidden_feature, node_n),
        "bn1": _init_bn(node_n, hidden_feature),
        "gc7": _init_gc(keys[1], hidden_feature, input_feature, node_n),
        "gcbs": [],
    }
    for i in range(num_stage):
        blk = {
            "gc1": _init_gc(keys[2 + 4 * i], hidden_feature, hidden_feature, node_n),
            "bn1": _init_bn(node_n, hidden_feature),
            "gc2": _init_gc(keys[3 + 4 * i], hidden_feature, hidden_feature, node_n),
            "bn2": _init_bn(node_n, hidden_feature),
        }
        params["gcbs"].append(blk)
    return params


# ---------------------------------------------------------------------------
# Pure-JAX reference (same eval-mode semantics, PyTorch operation order, f32).
# ---------------------------------------------------------------------------
def _ref_gc(x, gc, scale=None, shift=None, residual=None, apply_bn_tanh=False):
    y = jnp.matmul(gc["att"], jnp.matmul(x, gc["w"])) + gc["b"]
    if apply_bn_tanh:
        y = jnp.tanh(y * scale[None] + shift[None])
    if residual is not None:
        y = y + residual
    return y


def gcn_forward_ref(x, p, num_stage, is_output=False):
    y = _ref_gc(x, p["gc1"], p["bn1"]["scale"], p["bn1"]["shift"], apply_bn_tanh=True)
    for i in range(num_stage):
        blk = p["gcbs"][i]
        z = _ref_gc(y, blk["gc1"], blk["bn1"]["scale"], blk["bn1"]["shift"],
                    apply_bn_tanh=True)
        y = _ref_gc(z, blk["gc2"], blk["bn2"]["scale"], blk["bn2"]["shift"],
                    residual=y, apply_bn_tanh=True)
    if not is_output:
        y = _ref_gc(y, p["gc7"], residual=x)
    return y


if __name__ == "__main__":
    # batch=16 -> per grid-half: 8 batches -> 8*16 = 128 input/output lanes (lane dense),
    # 8*32 = 256 hidden lanes (full v6e/v7x MXU width).
    batch = 16
    node_n = 48
    input_feature = 16
    hidden_feature = 32
    num_stage = 2

    key = jax.random.PRNGKey(0)
    k_x, k_p = jax.random.split(key)
    x = jax.random.normal(k_x, (batch, node_n, input_feature), jnp.float32)
    params = init_gcn_params(k_p, input_feature, hidden_feature, num_stage, node_n)

    # Pack ONCE (load time), not per forward call.
    packed = pack_gcn_params(params, batch)
    jax.block_until_ready([v for v in packed.values() if hasattr(v, "block_until_ready")])

    out = gcn_forward(x, packed, is_output=False)
    out = jax.block_until_ready(out)

    ref = gcn_forward_ref(x, params, num_stage, is_output=False)
    # bf16 matmul operands (f32 accumulation) -> loosened tolerance vs f32 reference.
    np.testing.assert_allclose(np.asarray(out), np.asarray(ref), rtol=3e-2, atol=3e-2)
    assert out.shape == (batch, node_n, input_feature)
    print("KERNEL_OK")
</pallas_src>

<mosaic_0001>
module attributes {stable_mosaic.version = 11 : i64} {
  func.func @_gcn_fused_kernel(%arg0: i32, %arg1: memref<48x128xf32, #tpu.memory_space<vmem>>, %arg2: memref<128x256xbf16, #tpu.memory_space<vmem>>, %arg3: memref<48x48xbf16, #tpu.memory_space<vmem>>, %arg4: memref<48x256xf32, #tpu.memory_space<vmem>>, %arg5: memref<48x256xf32, #tpu.memory_space<vmem>>, %arg6: memref<4x256x256xbf16, #tpu.memory_space<vmem>>, %arg7: memref<4x48x48xbf16, #tpu.memory_space<vmem>>, %arg8: memref<4x48x256xf32, #tpu.memory_space<vmem>>, %arg9: memref<4x48x256xf32, #tpu.memory_space<vmem>>, %arg10: memref<256x128xbf16, #tpu.memory_space<vmem>>, %arg11: memref<48x48xbf16, #tpu.memory_space<vmem>>, %arg12: memref<1x128xf32, #tpu.memory_space<vmem>>, %arg13: memref<48x128xf32, #tpu.memory_space<vmem>>) attributes {dimension_semantics = [#tpu.dimension_semantics<parallel>], iteration_bounds = array<i64: 2>, scalar_prefetch = 0 : i64, scratch_operands = 0 : i64, tpu.core_type = #tpu.core_type<tc>, window_params = [{transform_indices = @transform_0, window_bounds = array<i64: 48, 128>}, {pipeline_mode = #tpu.pipeline_mode<synchronous>, transform_indices = @transform_1, window_bounds = array<i64: 128, 256>}, {pipeline_mode = #tpu.pipeline_mode<synchronous>, transform_indices = @transform_2, window_bounds = array<i64: 48, 48>}, {pipeline_mode = #tpu.pipeline_mode<synchronous>, transform_indices = @transform_3, window_bounds = array<i64: 48, 256>}, {pipeline_mode = #tpu.pipeline_mode<synchronous>, transform_indices = @transform_4, window_bounds = array<i64: 48, 256>}, {pipeline_mode = #tpu.pipeline_mode<synchronous>, transform_indices = @transform_5, window_bounds = array<i64: 4, 256, 256>}, {pipeline_mode = #tpu.pipeline_mode<synchronous>, transform_indices = @transform_6, window_bounds = array<i64: 4, 48, 48>}, {pipeline_mode = #tpu.pipeline_mode<synchronous>, transform_indices = @transform_7, window_bounds = array<i64: 4, 48, 256>}, {pipeline_mode = #tpu.pipeline_mode<synchronous>, transform_indices = @transform_8, window_bounds = array<i64: 4, 48, 256>}, {pipeline_mode = #tpu.pipeline_mode<synchronous>, transform_indices = @transform_9, window_bounds = array<i64: 256, 128>}, {pipeline_mode = #tpu.pipeline_mode<synchronous>, transform_indices = @transform_10, window_bounds = array<i64: 48, 48>}, {pipeline_mode = #tpu.pipeline_mode<synchronous>, transform_indices = @transform_11, window_bounds = array<i64: 1, 128>}, {transform_indices = @transform_12, window_bounds = array<i64: 48, 128>}]} {
    %c0 = arith.constant 0 : index
    %c0_0 = arith.constant 0 : index
    %0 = vector.load %arg1[%c0, %c0_0] : memref<48x128xf32, #tpu.memory_space<vmem>>, vector<48x128xf32>
    %c0_1 = arith.constant 0 : index
    %c0_2 = arith.constant 0 : index
    %1 = vector.load %arg3[%c0_1, %c0_2] : memref<48x48xbf16, #tpu.memory_space<vmem>>, vector<48x48xbf16>
    %2 = arith.truncf %0 : vector<48x128xf32> to vector<48x128xbf16>
    %cst = arith.constant dense<0.000000e+00> : vector<48x128xf32>
    %3 = tpu.matmul %1, %2, %cst {dimension_numbers = #tpu.dot_dimension_numbers<[1], [0], [0], [1], [0, 0, 1, 1], [], []>} : vector<48x48xbf16>, vector<48x128xbf16>, vector<48x128xf32> -> vector<48x128xf32>
    %4 = arith.truncf %3 : vector<48x128xf32> to vector<48x128xbf16>
    %c0_3 = arith.constant 0 : index
    %c0_4 = arith.constant 0 : index
    %5 = vector.load %arg2[%c0_3, %c0_4] : memref<128x256xbf16, #tpu.memory_space<vmem>>, vector<128x256xbf16>
    %cst_5 = arith.constant dense<0.000000e+00> : vector<48x256xf32>
    %6 = tpu.matmul %4, %5, %cst_5 {dimension_numbers = #tpu.dot_dimension_numbers<[1], [0], [0], [1], [0, 0, 1, 1], [], []>} : vector<48x128xbf16>, vector<128x256xbf16>, vector<48x256xf32> -> vector<48x256xf32>
    %c0_6 = arith.constant 0 : index
    %c0_7 = arith.constant 0 : index
    %7 = vector.load %arg4[%c0_6, %c0_7] : memref<48x256xf32, #tpu.memory_space<vmem>>, vector<48x256xf32>
    %8 = arith.mulf %6, %7 : vector<48x256xf32>
    %c0_8 = arith.constant 0 : index
    %c0_9 = arith.constant 0 : index
    %9 = vector.load %arg5[%c0_8, %c0_9] : memref<48x256xf32, #tpu.memory_space<vmem>>, vector<48x256xf32>
    %10 = arith.addf %8, %9 : vector<48x256xf32>
    %11 = math.tanh %10 : vector<48x256xf32>
    %12 = arith.truncf %11 : vector<48x256xf32> to vector<48x256xbf16>
    %c0_10 = arith.constant 0 : index
    %c0_11 = arith.constant 0 : index
    %c0_12 = arith.constant 0 : index
    %13 = vector.load %arg6[%c0_10, %c0_11, %c0_12] : memref<4x256x256xbf16, #tpu.memory_space<vmem>>, vector<1x256x256xbf16>
    %14 = vector.shape_cast %13 : vector<1x256x256xbf16> to vector<256x256xbf16>
    %cst_13 = arith.constant dense<0.000000e+00> : vector<48x256xf32>
    %15 = tpu.matmul %12, %14, %cst_13 {dimension_numbers = #tpu.dot_dimension_numbers<[1], [0], [0], [1], [0, 0, 1, 1], [], []>} : vector<48x256xbf16>, vector<256x256xbf16>, vector<48x256xf32> -> vector<48x256xf32>
    %c0_14 = arith.constant 0 : index
    %c0_15 = arith.constant 0 : index
    %c0_16 = arith.constant 0 : index
    %16 = vector.load %arg7[%c0_14, %c0_15, %c0_16] : memref<4x48x48xbf16, #tpu.memory_space<vmem>>, vector<1x48x48xbf16>
    %17 = vector.shape_cast %16 : vector<1x48x48xbf16> to vector<48x48xbf16>
    %18 = arith.truncf %15 : vector<48x256xf32> to vector<48x256xbf16>
    %cst_17 = arith.constant dense<0.000000e+00> : vector<48x256xf32>
    %19 = tpu.matmul %17, %18, %cst_17 {dimension_numbers = #tpu.dot_dimension_numbers<[1], [0], [0], [1], [0, 0, 1, 1], [], []>} : vector<48x48xbf16>, vector<48x256xbf16>, vector<48x256xf32> -> vector<48x256xf32>
    %c0_18 = arith.constant 0 : index
    %c0_19 = arith.constant 0 : index
    %c0_20 = arith.constant 0 : index
    %20 = vector.load %arg8[%c0_18, %c0_19, %c0_20] : memref<4x48x256xf32, #tpu.memory_space<vmem>>, vector<1x48x256xf32>
    %21 = vector.shape_cast %20 : vector<1x48x256xf32> to vector<48x256xf32>
    %22 = arith.mulf %19, %21 : vector<48x256xf32>
    %c0_21 = arith.constant 0 : index
    %c0_22 = arith.constant 0 : index
    %c0_23 = arith.constant 0 : index
    %23 = vector.load %arg9[%c0_21, %c0_22, %c0_23] : memref<4x48x256xf32, #tpu.memory_space<vmem>>, vector<1x48x256xf32>
    %24 = vector.shape_cast %23 : vector<1x48x256xf32> to vector<48x256xf32>
    %25 = arith.addf %22, %24 : vector<48x256xf32>
    %26 = math.tanh %25 : vector<48x256xf32>
    %27 = arith.truncf %26 : vector<48x256xf32> to vector<48x256xbf16>
    %c1 = arith.constant 1 : index
    %c0_24 = arith.constant 0 : index
    %c0_25 = arith.constant 0 : index
    %28 = vector.load %arg6[%c1, %c0_24, %c0_25] : memref<4x256x256xbf16, #tpu.memory_space<vmem>>, vector<1x256x256xbf16>
    %29 = vector.shape_cast %28 : vector<1x256x256xbf16> to vector<256x256xbf16>
    %cst_26 = arith.constant dense<0.000000e+00> : vector<48x256xf32>
    %30 = tpu.matmul %27, %29, %cst_26 {dimension_numbers = #tpu.dot_dimension_numbers<[1], [0], [0], [1], [0, 0, 1, 1], [], []>} : vector<48x256xbf16>, vector<256x256xbf16>, vector<48x256xf32> -> vector<48x256xf32>
    %c1_27 = arith.constant 1 : index
    %c0_28 = arith.constant 0 : index
    %c0_29 = arith.constant 0 : index
    %31 = vector.load %arg7[%c1_27, %c0_28, %c0_29] : memref<4x48x48xbf16, #tpu.memory_space<vmem>>, vector<1x48x48xbf16>
    %32 = vector.shape_cast %31 : vector<1x48x48xbf16> to vector<48x48xbf16>
    %33 = arith.truncf %30 : vector<48x256xf32> to vector<48x256xbf16>
    %cst_30 = arith.constant dense<0.000000e+00> : vector<48x256xf32>
    %34 = tpu.matmul %32, %33, %cst_30 {dimension_numbers = #tpu.dot_dimension_numbers<[1], [0], [0], [1], [0, 0, 1, 1], [], []>} : vector<48x48xbf16>, vector<48x256xbf16>, vector<48x256xf32> -> vector<48x256xf32>
    %c1_31 = arith.constant 1 : index
    %c0_32 = arith.constant 0 : index
    %c0_33 = arith.constant 0 : index
    %35 = vector.load %arg8[%c1_31, %c0_32, %c0_33] : memref<4x48x256xf32, #tpu.memory_space<vmem>>, vector<1x48x256xf32>
    %36 = vector.shape_cast %35 : vector<1x48x256xf32> to vector<48x256xf32>
    %37 = arith.mulf %34, %36 : vector<48x256xf32>
    %c1_34 = arith.constant 1 : index
    %c0_35 = arith.constant 0 : index
    %c0_36 = arith.constant 0 : index
    %38 = vector.load %arg9[%c1_34, %c0_35, %c0_36] : memref<4x48x256xf32, #tpu.memory_space<vmem>>, vector<1x48x256xf32>
    %39 = vector.shape_cast %38 : vector<1x48x256xf32> to vector<48x256xf32>
    %40 = arith.addf %37, %39 : vector<48x256xf32>
    %41 = math.tanh %40 : vector<48x256xf32>
    %42 = arith.addf %41, %11 : vector<48x256xf32>
    %43 = arith.truncf %42 : vector<48x256xf32> to vector<48x256xbf16>
    %c2 = arith.constant 2 : index
    %c0_37 = arith.constant 0 : index
    %c0_38 = arith.constant 0 : index
    %44 = vector.load %arg6[%c2, %c0_37, %c0_38] : memref<4x256x256xbf16, #tpu.memory_space<vmem>>, vector<1x256x256xbf16>
    %45 = vector.shape_cast %44 : vector<1x256x256xbf16> to vector<256x256xbf16>
    %cst_39 = arith.constant dense<0.000000e+00> : vector<48x256xf32>
    %46 = tpu.matmul %43, %45, %cst_39 {dimension_numbers = #tpu.dot_dimension_numbers<[1], [0], [0], [1], [0, 0, 1, 1], [], []>} : vector<48x256xbf16>, vector<256x256xbf16>, vector<48x256xf32> -> vector<48x256xf32>
    %c2_40 = arith.constant 2 : index
    %c0_41 = arith.constant 0 : index
    %c0_42 = arith.constant 0 : index
    %47 = vector.load %arg7[%c2_40, %c0_41, %c0_42] : memref<4x48x48xbf16, #tpu.memory_space<vmem>>, vector<1x48x48xbf16>
    %48 = vector.shape_cast %47 : vector<1x48x48xbf16> to vector<48x48xbf16>
    %49 = arith.truncf %46 : vector<48x256xf32> to vector<48x256xbf16>
    %cst_43 = arith.constant dense<0.000000e+00> : vector<48x256xf32>
    %50 = tpu.matmul %48, %49, %cst_43 {dimension_numbers = #tpu.dot_dimension_numbers<[1], [0], [0], [1], [0, 0, 1, 1], [], []>} : vector<48x48xbf16>, vector<48x256xbf16>, vector<48x256xf32> -> vector<48x256xf32>
    %c2_44 = arith.constant 2 : index
    %c0_45 = arith.constant 0 : index
    %c0_46 = arith.constant 0 : index
    %51 = vector.load %arg8[%c2_44, %c0_45, %c0_46] : memref<4x48x256xf32, #tpu.memory_space<vmem>>, vector<1x48x256xf32>
    %52 = vector.shape_cast %51 : vector<1x48x256xf32> to vector<48x256xf32>
    %53 = arith.mulf %50, %52 : vector<48x256xf32>
    %c2_47 = arith.constant 2 : index
    %c0_48 = arith.constant 0 : index
    %c0_49 = arith.constant 0 : index
    %54 = vector.load %arg9[%c2_47, %c0_48, %c0_49] : memref<4x48x256xf32, #tpu.memory_space<vmem>>, vector<1x48x256xf32>
    %55 = vector.shape_cast %54 : vector<1x48x256xf32> to vector<48x256xf32>
    %56 = arith.addf %53, %55 : vector<48x256xf32>
    %57 = math.tanh %56 : vector<48x256xf32>
    %58 = arith.truncf %57 : vector<48x256xf32> to vector<48x256xbf16>
    %c3 = arith.constant 3 : index
    %c0_50 = arith.constant 0 : index
    %c0_51 = arith.constant 0 : index
    %59 = vector.load %arg6[%c3, %c0_50, %c0_51] : memref<4x256x256xbf16, #tpu.memory_space<vmem>>, vector<1x256x256xbf16>
    %60 = vector.shape_cast %59 : vector<1x256x256xbf16> to vector<256x256xbf16>
    %cst_52 = arith.constant dense<0.000000e+00> : vector<48x256xf32>
    %61 = tpu.matmul %58, %60, %cst_52 {dimension_numbers = #tpu.dot_dimension_numbers<[1], [0], [0], [1], [0, 0, 1, 1], [], []>} : vector<48x256xbf16>, vector<256x256xbf16>, vector<48x256xf32> -> vector<48x256xf32>
    %c3_53 = arith.constant 3 : index
    %c0_54 = arith.constant 0 : index
    %c0_55 = arith.constant 0 : index
    %62 = vector.load %arg7[%c3_53, %c0_54, %c0_55] : memref<4x48x48xbf16, #tpu.memory_space<vmem>>, vector<1x48x48xbf16>
    %63 = vector.shape_cast %62 : vector<1x48x48xbf16> to vector<48x48xbf16>
    %64 = arith.truncf %61 : vector<48x256xf32> to vector<48x256xbf16>
    %cst_56 = arith.constant dense<0.000000e+00> : vector<48x256xf32>
    %65 = tpu.matmul %63, %64, %cst_56 {dimension_numbers = #tpu.dot_dimension_numbers<[1], [0], [0], [1], [0, 0, 1, 1], [], []>} : vector<48x48xbf16>, vector<48x256xbf16>, vector<48x256xf32> -> vector<48x256xf32>
    %c3_57 = arith.constant 3 : index
    %c0_58 = arith.constant 0 : index
    %c0_59 = arith.constant 0 : index
    %66 = vector.load %arg8[%c3_57, %c0_58, %c0_59] : memref<4x48x256xf32, #tpu.memory_space<vmem>>, vector<1x48x256xf32>
    %67 = vector.shape_cast %66 : vector<1x48x256xf32> to vector<48x256xf32>
    %68 = arith.mulf %65, %67 : vector<48x256xf32>
    %c3_60 = arith.constant 3 : index
    %c0_61 = arith.constant 0 : index
    %c0_62 = arith.constant 0 : index
    %69 = vector.load %arg9[%c3_60, %c0_61, %c0_62] : memref<4x48x256xf32, #tpu.memory_space<vmem>>, vector<1x48x256xf32>
    %70 = vector.shape_cast %69 : vector<1x48x256xf32> to vector<48x256xf32>
    %71 = arith.addf %68, %70 : vector<48x256xf32>
    %72 = math.tanh %71 : vector<48x256xf32>
    %73 = arith.addf %72, %42 : vector<48x256xf32>
    %74 = arith.truncf %73 : vector<48x256xf32> to vector<48x256xbf16>
    %c0_63 = arith.constant 0 : index
    %c0_64 = arith.constant 0 : index
    %75 = vector.load %arg10[%c0_63, %c0_64] : memref<256x128xbf16, #tpu.memory_space<vmem>>, vector<256x128xbf16>
    %cst_65 = arith.constant dense<0.000000e+00> : vector<48x128xf32>
    %76 = tpu.matmul %74, %75, %cst_65 {dimension_numbers = #tpu.dot_dimension_numbers<[1], [0], [0], [1], [0, 0, 1, 1], [], []>} : vector<48x256xbf16>, vector<256x128xbf16>, vector<48x128xf32> -> vector<48x128xf32>
    %c0_66 = arith.constant 0 : index
    %c0_67 = arith.constant 0 : index
    %77 = vector.load %arg11[%c0_66, %c0_67] : memref<48x48xbf16, #tpu.memory_space<vmem>>, vector<48x48xbf16>
    %78 = arith.truncf %76 : vector<48x128xf32> to vector<48x128xbf16>
    %cst_68 = arith.constant dense<0.000000e+00> : vector<48x128xf32>
    %79 = tpu.matmul %77, %78, %cst_68 {dimension_numbers = #tpu.dot_dimension_numbers<[1], [0], [0], [1], [0, 0, 1, 1], [], []>} : vector<48x48xbf16>, vector<48x128xbf16>, vector<48x128xf32> -> vector<48x128xf32>
    %c0_69 = arith.constant 0 : index
    %c0_70 = arith.constant 0 : index
    %80 = vector.load %arg12[%c0_69, %c0_70] : memref<1x128xf32, #tpu.memory_space<vmem>>, vector<1x128xf32>
    %81 = vector.broadcast %80 : vector<1x128xf32> to vector<48x128xf32>
    %82 = arith.addf %79, %81 : vector<48x128xf32>
    %83 = arith.addf %82, %0 : vector<48x128xf32>
    %c0_71 = arith.constant 0 : index
    %c0_72 = arith.constant 0 : index
    %84 = vector.load %arg13[%c0_71, %c0_72] : memref<48x128xf32, #tpu.memory_space<vmem>>, vector<48x128xf32>
    tpu.vector_store %arg13[%c0_71, %c0_72], %83 {strides = array<i32>} : memref<48x128xf32, #tpu.memory_space<vmem>>, vector<48x128xf32>,
    return
  }
  func.func @transform_0(%arg0: i32) -> (i32, i32) {
    %c0_i32 = arith.constant 0 : i32
    %c0_i32_0 = arith.constant 0 : i32
    return %c0_i32, %arg0 : i32, i32
  }
  func.func @transform_1(%arg0: i32) -> (i32, i32) {
    %c0_i32 = arith.constant 0 : i32
    %c0_i32_0 = arith.constant 0 : i32
    %c0_i32_1 = arith.constant 0 : i32
    return %c0_i32, %c0_i32_0 : i32, i32
  }
  func.func @transform_2(%arg0: i32) -> (i32, i32) {
    %c0_i32 = arith.constant 0 : i32
    %c0_i32_0 = arith.constant 0 : i32
    %c0_i32_1 = arith.constant 0 : i32
    return %c0_i32, %c0_i32_0 : i32, i32
  }
  func.func @transform_3(%arg0: i32) -> (i32, i32) {
    %c0_i32 = arith.constant 0 : i32
    %c0_i32_0 = arith.constant 0 : i32
    %c0_i32_1 = arith.constant 0 : i32
    return %c0_i32, %c0_i32_0 : i32, i32
  }
  func.func @transform_4(%arg0: i32) -> (i32, i32) {
    %c0_i32 = arith.constant 0 : i32
    %c0_i32_0 = arith.constant 0 : i32
    %c0_i32_1 = arith.constant 0 : i32
    return %c0_i32, %c0_i32_0 : i32, i32
  }
  func.func @transform_5(%arg0: i32) -> (i32, i32, i32) {
    %c0_i32 = arith.constant 0 : i32
    %c0_i32_0 = arith.constant 0 : i32
    %c0_i32_1 = arith.constant 0 : i32
    %c0_i32_2 = arith.constant 0 : i32
    return %c0_i32, %c0_i32_0, %c0_i32_1 : i32, i32, i32
  }
  func.func @transform_6(%arg0: i32) -> (i32, i32, i32) {
    %c0_i32 = arith.constant 0 : i32
    %c0_i32_0 = arith.constant 0 : i32
    %c0_i32_1 = arith.constant 0 : i32
    %c0_i32_2 = arith.constant 0 : i32
    return %c0_i32, %c0_i32_0, %c0_i32_1 : i32, i32, i32
  }
  func.func @transform_7(%arg0: i32) -> (i32, i32, i32) {
    %c0_i32 = arith.constant 0 : i32
    %c0_i32_0 = arith.constant 0 : i32
    %c0_i32_1 = arith.constant 0 : i32
    %c0_i32_2 = arith.constant 0 : i32
    return %c0_i32, %c0_i32_0, %c0_i32_1 : i32, i32, i32
  }
  func.func @transform_8(%arg0: i32) -> (i32, i32, i32) {
    %c0_i32 = arith.constant 0 : i32
    %c0_i32_0 = arith.constant 0 : i32
    %c0_i32_1 = arith.constant 0 : i32
    %c0_i32_2 = arith.constant 0 : i32
    return %c0_i32, %c0_i32_0, %c0_i32_1 : i32, i32, i32
  }
  func.func @transform_9(%arg0: i32) -> (i32, i32) {
    %c0_i32 = arith.constant 0 : i32
    %c0_i32_0 = arith.constant 0 : i32
    %c0_i32_1 = arith.constant 0 : i32
    return %c0_i32, %c0_i32_0 : i32, i32
  }
  func.func @transform_10(%arg0: i32) -> (i32, i32) {
    %c0_i32 = arith.constant 0 : i32
    %c0_i32_0 = arith.constant 0 : i32
    %c0_i32_1 = arith.constant 0 : i32
    return %c0_i32, %c0_i32_0 : i32, i32
  }
  func.func @transform_11(%arg0: i32) -> (i32, i32) {
    %c0_i32 = arith.constant 0 : i32
    %c0_i32_0 = arith.constant 0 : i32
    %c0_i32_1 = arith.constant 0 : i32
    return %c0_i32, %c0_i32_0 : i32, i32
  }
  func.func @transform_12(%arg0: i32) -> (i32, i32) {
    %c0_i32 = arith.constant 0 : i32
    %c0_i32_0 = arith.constant 0 : i32
    return %c0_i32, %arg0 : i32, i32
  }
}

</mosaic_0001>

<bundles_post_ra>
// kernel: tpu_custom_call.1
= control target key start
LH: loop header
LB: loop body
LE: loop exit
PB: predicated region body
PF: predicated region fallthrough
CT: control target
= control target key end

     0   :  { %s4880_s0 = inlined_call_operand.hbm [shape: f32[48,256], index: 0, kind: input, shape index: {}]   ;;  %s4881_s1 = inlined_call_operand.hbm [shape: bf16[128,256], index: 1, kind: input, shape index: {}]   ;;  %s4882_s2 = inlined_call_operand.hbm [shape: bf16[48,48], index: 2, kind: input, shape index: {}]   ;;  %s4883_s3 = inlined_call_operand.hbm [shape: f32[48,256], index: 3, kind: input, shape index: {}]   ;;  %s4884_s4 = inlined_call_operand.hbm [shape: f32[48,256], index: 4, kind: input, shape index: {}]   ;;  %s4885_s5 = inlined_call_operand.hbm [shape: bf16[4,256,256], index: 5, kind: input, shape index: {}]   ;;  %s4886_s6 = inlined_call_operand.hbm [shape: bf16[4,48,48], index: 6, kind: input, shape index: {}]   ;;  %s4887_s7 = inlined_call_operand.hbm [shape: f32[4,48,256], index: 7, kind: input, shape index: {}]   ;;  %s4888_s8 = inlined_call_operand.hbm [shape: f32[4,48,256], index: 8, kind: input, shape index: {}]   ;;  %s4889_s9 = inlined_call_operand.hbm [shape: bf16[256,128], index: 9, kind: input, shape index: {}]   ;;  %s4890_s10 = inlined_call_operand.hbm [shape: bf16[48,48], index: 10, kind: input, shape index: {}]   ;;  %s4891_s11 = inlined_call_operand.vmem [shape: f32[1,128], index: 11, kind: input, shape index: {}]   ;;  %s4892_s12 = inlined_call_operand.hbm [shape: f32[48,256], index: 12, kind: output, shape index: {}]  }
   0x1   :  { %4902 = sst [smem:[#allocation28_spill]] %s4881_s1 }
   0x2   :  { %4903 = sst [smem:[#allocation29_spill]] %s4882_s2 }
   0x3   :  { %4904 = sst [smem:[#allocation30_spill]] %s4883_s3 }
   0x4   :  { %4905 = sst [smem:[#allocation31_spill]] %s4884_s4 }
   0x5   :  { %4906 = sst [smem:[#allocation32_spill]] %s4885_s5 }
   0x6   :  { %4907 = sst [smem:[#allocation33_spill]] %s4886_s6 }
   0x7   :  { %4908 = sst [smem:[#allocation34_spill]] %s4887_s7 }
   0x8   :  { %17 = vsyncpa [#allocation3], 0 }
   0x9   :  { %19 = vsyncpa [#allocation3 + $0x1], 0 }
   0xa   :  { %20 = vsyncpa [#allocation6], 0 }
   0xb   :  { %21 = vsyncpa [#allocation9], 0 }
   0xc   :  { %22 = vsyncpa [#allocation12], 0 }
   0xd   :  { %23 = vsyncpa [#allocation15], 0 }
   0xe   :  { %24 = vsyncpa [#allocation18], 0 }
   0xf   :  { %25 = vsyncpa [#allocation4], 0 }
  0x10   :  { %27 = vsyncpa [#allocation4 + $0x1], 0  ;;  %s4400_s21 = smov 0   ;;  %s4402_s22 = smov 0  }
  0x11   :  { %s4404_s23 = smov 0   ;;  %s4406_s24 = smov 0  }
  0x12 LB: > { %s4311_s25 = smov [#allocation5]   ;;  %s4421_s27 = sadd.s32 4294967295, %s4309_s24   ;;  %s4309_s24 = sphi %s4406_s24, %s4945_s24   ;;  %s4305_s23 = sphi %s4404_s23, %s4944_s23   ;;  %s4301_s22 = sphi %s4402_s22, %s4943_s22   ;;  %s4297_s21 = sphi %s4400_s21, %s4942_s21  }
  0x13   : > { %s333_s26 = sshll.u32 %s4311_s25, 4  ;;  %p3094_p0 = scmp.ge.s32.totalorder %s4309_s24, 1  ;;  %s334_s26 = int_to_ptr.vmem [resolvable:$true] %s333_s26 }
  0x14   : > { %p4898_p1 = scmp.eq.s32.totalorder %s4421_s27, 0  ;;  %p321_p2 = scmp.lt.s32.totalorder %s4309_s24, 3 }
  0x15   : > { %s4312_s29 = smov [#allocation8]   ;;  %s4313_s14 = smov [#allocation11]  }
  0x16   : > { %p4426_p3 = pnand %p3094_p0, %p321_p2  ;;  %s359_s30 = sshll.u32 %s4312_s29, 4  ;;  %s4439_s30 = int_to_ptr.vmem [resolvable:$true] %s359_s30 }
  0x17   : > { %s4441_s15 = sshll.u32 %s4313_s14, 4  ;;  %s3948_s17 = scalar_lea.vmem %s334_s26, 2048  ;;  %s386_s15 = int_to_ptr.vmem [resolvable:$true] %s4441_s15 }
  0x18   : > { %s4909_s28 = scalar_select %p4426_p3, 1, 0 }
  0x19   : > { %p3446_p5 = pneg %p4426_p3  ;;  %p3949_p8 = scmp.ne.s32.totalorder %s334_s26, %s3948_s17 }
  0x1a   : > { %p3956_p11 = scmp.lt.s32.totalorder %s334_s26, %s334_s26  ;;  %p3957_p12 = scmp.lt.s32.totalorder %s3948_s17, %s3948_s17 }
  0x1b   : > { %p4435_p6 = pnand %p3446_p5, %p4898_p1 }
  0x1c   : > { %p3958_p13 = por %p3957_p12, %p3956_p11 }
  0x1d   : > { %p4445_p7 = pneg %p4435_p6 }
  0x1f   : > { %p3951_p9 = pnand %p3949_p8, %p4445_p7 }
  0x21   : > { %p3952_p10 = pneg %p3951_p9 }
  0x23   : > { %p3959_p0 = pnand %p3958_p13, %p3952_p10 }
  0x25   : > { %3962 = shalt.err (!%p3959_p0)
}
  0x26   : > { %s4893_s18 = smov 128   ;;  %s4894_s19 = smov 8  }
  0x27   : > { %s4912_s1 = sld [smem:[#allocation28_spill]]  ;;  %s3974_s29 = scalar_lea.vmem %s4439_s30, 1536 }
  0x28   : > { %p3975_p2 = scmp.ne.s32.totalorder %s4439_s30, %s3974_s29  ;;  %p3982_p9 = scmp.lt.s32.totalorder %s4439_s30, %s4439_s30 }
  0x29   : > { %p3983_p10 = scmp.lt.s32.totalorder %s3974_s29, %s3974_s29 }
  0x2a   : > { %p3977_p5 = pnand %p3975_p2, %p4445_p7 }
  0x2b   : > { %p3984_p11 = por %p3983_p10, %p3982_p9 }
  0x2c   : > { %p3978_p8 = pneg %p3977_p5 }
  0x2d   : > { %3449 = dma.hbm_to_vmem [thread:$0]  (!%p4435_p6), %s4912_s1, 2048, %s334_s26, [#allocation6], %s4893_s18, %s4893_s18, %s4894_s19  }
  0x2e   : > { %p3985_p12 = pnand %p3984_p11, %p3978_p8 }
  0x30   : > { %3988 = shalt.err (!%p3985_p12)
}
  0x31   : > { %s4895_s14 = smov 256   ;;  %s4897_s17 = smov 16  }
  0x32   : > { %s4913_s3 = sld [smem:[#allocation30_spill]]  ;;  %s4000_s25 = scalar_lea.vmem %s386_s15, 16384 }
  0x33   : > { %p4001_p13 = scmp.ne.s32.totalorder %s386_s15, %s4000_s25  ;;  %p4008_p5 = scmp.lt.s32.totalorder %s386_s15, %s386_s15 }
  0x34   : > { %p4009_p8 = scmp.lt.s32.totalorder %s4000_s25, %s4000_s25 }
  0x35   : > { %p4003_p0 = pnand %p4001_p13, %p4445_p7 }
  0x36   : > { %p4010_p9 = por %p4009_p8, %p4008_p5 }
  0x37   : > { %p4004_p2 = pneg %p4003_p0 }
  0x38   : > { %3455 = dma.hbm_to_vmem [thread:$0]  (!%p4435_p6), %s4913_s3, 1536, %s4439_s30, [#allocation9], %s4895_s14, %s4895_s14, %s4897_s17  }
  0x39   : > { %p4011_p10 = pnand %p4010_p9, %p4004_p2 }
  0x3b   : > { %4014 = shalt.err (!%p4011_p10)
}
  0x3c   : > { %s4914_s5 = sld [smem:[#allocation32_spill]]  ;;  %s4318_s30 = smov [#allocation14]  }
  0x3d   : > { %s411_s26 = sshll.u32 %s4318_s30, 4  ;;  %s412_s26 = int_to_ptr.vmem [resolvable:$true] %s411_s26 }
  0x3e   : > { %s4026_s20 = scalar_lea.vmem %s412_s26, 6144  ;;  %p4034_p0 = scmp.lt.s32.totalorder %s412_s26, %s412_s26 }
  0x3f   : > { %p4027_p11 = scmp.ne.s32.totalorder %s412_s26, %s4026_s20  ;;  %p4035_p2 = scmp.lt.s32.totalorder %s4026_s20, %s4026_s20 }
  0x41   : > { %p4029_p12 = pnand %p4027_p11, %p4445_p7  ;;  %p4036_p5 = por %p4035_p2, %p4034_p0 }
  0x42   : > { %3461 = dma.hbm_to_vmem [thread:$0]  (!%p4435_p6), %s4914_s5, 16384, %s386_s15, [#allocation12], %s4893_s18, %s4893_s18, %s4894_s19  }
  0x43   : > { %p4030_p13 = pneg %p4029_p12 }
  0x45   : > { %p4037_p8 = pnand %p4036_p5, %p4030_p13 }
  0x47   : > { %4040 = shalt.err (!%p4037_p8)
}
  0x48   : > { %s4915_s7 = sld [smem:[#allocation34_spill]]  ;;  %s4319_s25 = smov [#allocation17]  }
  0x49   : > { %s437_s29 = sshll.u32 %s4319_s25, 4  ;;  %s4320_s30 = smov [#allocation7]   ;;  %s438_s29 = int_to_ptr.vmem [resolvable:$true] %s437_s29 }
  0x4a   : > { %s346_s18 = sshll.u32 %s4320_s30, 4  ;;  %s4052_s20 = scalar_lea.vmem %s438_s29, 2048  ;;  %s347_s18 = int_to_ptr.vmem [resolvable:$true] %s346_s18 }
  0x4b   : > { %p4053_p9 = scmp.ne.s32.totalorder %s438_s29, %s4052_s20  ;;  %p4060_p12 = scmp.lt.s32.totalorder %s438_s29, %s438_s29 }
  0x4c   : > { %p4061_p13 = scmp.lt.s32.totalorder %s4052_s20, %s4052_s20 }
  0x4d   : > { %p4055_p10 = pnand %p4053_p9, %p4445_p7 }
  0x4e   : > { %3467 = dma.hbm_to_vmem [thread:$0]  (!%p4435_p6), %s4915_s7, 6144, %s412_s26, [#allocation15], %s4895_s14, %s4895_s14, %s4897_s17  }
  0x4f   : > { %p4056_p11 = pneg %p4055_p10  ;;  %p4062_p0 = por %p4061_p13, %p4060_p12 }
  0x51   : > { %p4063_p2 = pnand %p4062_p0, %p4056_p11 }
  0x53   : > { %4066 = shalt.err (!%p4063_p2)
}
  0x54   : > { %s4321_s19 = smov 64   ;;  %s4322_s26 = smov 4  }
  0x55   : > { %3473 = dma.hbm_to_vmem [thread:$0]  (!%p4435_p6), %s4889_s9, 2048, %s438_s29, [#allocation18], %s4321_s19, %s4321_s19, %s4322_s26  }
  0x56   : > { %s4078_s25 = scalar_lea.vmem %s347_s18, 384  ;;  %p4086_p10 = scmp.lt.s32.totalorder %s347_s18, %s347_s18 }
  0x57   : > { %p4079_p5 = scmp.ne.s32.totalorder %s347_s18, %s4078_s25  ;;  %p4087_p11 = scmp.lt.s32.totalorder %s4078_s25, %s4078_s25 }
  0x59   : > { %p4081_p8 = pnand %p4079_p5, %p4445_p7  ;;  %p4088_p12 = por %p4087_p11, %p4086_p10 }
  0x5b   : > { %p4082_p9 = pneg %p4081_p8 }
  0x5d   : > { %p4089_p13 = pnand %p4088_p12, %p4082_p9 }
  0x5f   : > { %4092 = shalt.err (!%p4089_p13)
}
  0x60   : > { %s4916_s2 = sld [smem:[#allocation29_spill]]  ;;  %s4323_s29 = smov [#allocation10]  }
  0x61   : > { %s372_s1 = sshll.u32 %s4323_s29, 4  ;;  %s4324_s15 = smov [#allocation13]   ;;  %s373_s1 = int_to_ptr.vmem [resolvable:$true] %s372_s1 }
  0x62   : > { %s398_s14 = sshll.u32 %s4324_s15, 4  ;;  %s4104_s25 = scalar_lea.vmem %s373_s1, 1536  ;;  %s399_s14 = int_to_ptr.vmem [resolvable:$true] %s398_s14 }
  0x63   : > { %p4105_p0 = scmp.ne.s32.totalorder %s373_s1, %s4104_s25  ;;  %p4112_p8 = scmp.lt.s32.totalorder %s373_s1, %s373_s1 }
  0x64   : > { %p4113_p9 = scmp.lt.s32.totalorder %s4104_s25, %s4104_s25 }
  0x65   : > { %p4107_p2 = pnand %p4105_p0, %p4445_p7 }
  0x66   : > { %3452 = dma.hbm_to_vmem [thread:$0]  (!%p4435_p6), %s4916_s2, 384, %s347_s18, [#allocation6], %s4321_s19, %s4321_s19, %s4322_s26  }
  0x67   : > { %p4108_p5 = pneg %p4107_p2  ;;  %p4114_p10 = por %p4113_p9, %p4112_p8 }
  0x69   : > { %p4115_p11 = pnand %p4114_p10, %p4108_p5 }
  0x6b   : > { %4118 = shalt.err (!%p4115_p11)
}
  0x6c   : > { %s4917_s18 = smov 256   ;;  %s4918_s4 = sld [smem:[#allocation31_spill]] }
  0x6d   : > { %s4130_s29 = scalar_lea.vmem %s399_s14, 1536  ;;  %p4138_p2 = scmp.lt.s32.totalorder %s399_s14, %s399_s14 }
  0x6e   : > { %p4131_p12 = scmp.ne.s32.totalorder %s399_s14, %s4130_s29  ;;  %p4139_p4 = scmp.lt.s32.totalorder %s4130_s29, %s4130_s29 }
  0x70   : > { %p4133_p13 = pnand %p4131_p12, %p4445_p7  ;;  %p4140_p8 = por %p4139_p4, %p4138_p2 }
  0x72   : > { %3458 = dma.hbm_to_vmem [thread:$0]  (!%p4435_p6), %s4918_s4, 1536, %s373_s1, [#allocation9], %s4917_s18, %s4917_s18, %s4897_s17  }
  0x73   : > { %p4134_p0 = pneg %p4133_p13 }
  0x75   : > { %p4141_p5 = pnand %p4140_p8, %p4134_p0 }
  0x77   : > { %4144 = shalt.err (!%p4141_p5)
}
  0x78   : > { %s4919_s6 = sld [smem:[#allocation33_spill]]  ;;  %s4325_s1 = smov [#allocation16]  }
  0x79   : > { %s424_s30 = sshll.u32 %s4325_s1, 4  ;;  %s4326_s20 = smov [#allocation19]   ;;  %s425_s30 = int_to_ptr.vmem [resolvable:$true] %s424_s30 }
  0x7a   : > { %s450_s17 = sshll.u32 %s4326_s20, 4  ;;  %s4156_s29 = scalar_lea.vmem %s425_s30, 6144  ;;  %s451_s17 = int_to_ptr.vmem [resolvable:$true] %s450_s17 }
  0x7b   : > { %p4157_p4 = scmp.ne.s32.totalorder %s425_s30, %s4156_s29  ;;  %p4164_p11 = scmp.lt.s32.totalorder %s425_s30, %s425_s30 }
  0x7c   : > { %p4165_p12 = scmp.lt.s32.totalorder %s4156_s29, %s4156_s29 }
  0x7d   : > { %p4159_p9 = pnand %p4157_p4, %p4445_p7 }
  0x7e   : > { %3464 = dma.hbm_to_vmem [thread:$0]  (!%p4435_p6), %s4919_s6, 1536, %s399_s14, [#allocation12], %s4321_s19, %s4321_s19, %s4322_s26  }
  0x7f   : > { %p4160_p10 = pneg %p4159_p9  ;;  %p4166_p13 = por %p4165_p12, %p4164_p11 }
  0x81   : > { %p4167_p0 = pnand %p4166_p13, %p4160_p10 }
  0x83   : > { %4170 = shalt.err (!%p4167_p0)
}
  0x84   : > { %s4920_s15 = smov 16   ;;  %s4182_s1 = scalar_lea.vmem %s451_s17, 384 }
  0x85   : > { %3470 = dma.hbm_to_vmem [thread:$0]  (!%p4435_p6), %s4888_s8, 6144, %s425_s30, [#allocation15], %s4917_s18, %s4917_s18, %s4920_s15  }
  0x86   : > { %p4183_p2 = scmp.ne.s32.totalorder %s451_s17, %s4182_s1  ;;  %p4190_p4 = scmp.lt.s32.totalorder %s451_s17, %s451_s17 }
  0x87   : > { %p4191_p9 = scmp.lt.s32.totalorder %s4182_s1, %s4182_s1 }
  0x88   : > { %p4185_p8 = pnand %p4183_p2, %p4445_p7 }
  0x89   : > { %p4192_p11 = por %p4191_p9, %p4190_p4 }
  0x8a   : > { %p4186_p5 = pneg %p4185_p8 }
  0x8c   : > { %p4193_p10 = pnand %p4192_p11, %p4186_p5 }
  0x8e   : > { %4196 = shalt.err (!%p4193_p10)
}
  0x8f   : > { %3476 = dma.hbm_to_vmem [thread:$0]  (!%p4435_p6), %s4890_s10, 384, %s451_s17, [#allocation18], %s4321_s19, %s4321_s19, %s4322_s26  }
  0x90   : > { %s3093_s13 = sadd.s32 4294967294, %s4309_s24   ;;  %s4557_s16 = sadd.s32 1, %s4309_s24  }
  0x91   : > { %s37_s30 = ssub.s32 %s4309_s24, %s4557_s16  ;;  %s40_s15 = sadd.s32 1, %s4305_s23 }
  0x92   : > { %p38_p7 = scmp.eq.s32.totalorder %s37_s30, 0  ;;  %p47_p12 = scmp.ne.s32.totalorder %s4305_s23, %s4301_s22 }
  0x93   : > { %p48_p13 = scmp.eq.s32.totalorder %s4309_s24, 0  ;;  %p53_p0 = scmp.ne.s32.totalorder %s4301_s22, %s4297_s21 }
  0x94   : > { %s4568_s14 = scalar_select %p38_p7, %s4305_s23, %s40_s15  }
  0x95   : > { %p49_p2 = por %p48_p13, %p47_p12  ;;  %p4572_p8 = por %p4898_p1, %p53_p0 }
  0x96   : > { %p308_p6 = scmp.eq.s32.totalorder %s4421_s27, 1  ;;  %p314_p5 = scmp.eq.s32.totalorder %s3093_s13, 1 }
  0x97   : > { %s4921_s25 = scalar_select %p4572_p8, 1, 0 }
  0x98   : > { %p3495_p4 = scmp.lt.s32.totalorder %s4309_s24, 2  ;;  %s467_s19 = sand.u32 1, %s4305_s23  }
  0x99   : > { %p4579_p9 = por %p308_p6, %p47_p12  ;;  %p4583_p11 = por %p314_p5, %p53_p0 }
  0x9a   : > { %s3400_s1 = smul.u32 48, %s467_s19  ;;  %s3106_s20 = sshll.u32 %s4309_s24, 7 }
  0x9b   : > { %s4922_s17 = scalar_select %p4579_p9, 1, 0 }
  0x9c   : > { %s4923_s26 = scalar_select %p4583_p11, 1, 0 }
  0x9d   : > { %p4588_p10 = pnand %p3495_p4, %p49_p2  ;;  %s4595_s13 = scalar_lea.hbm %s4880_s0, %s3106_s20 }
  0x9e   : > { %s471_s2 = scalar_lea.vmem [#allocation2], %s3400_s1  ;;  %s4599_s4 = scalar_lea.sflag [#allocation3], %s467_s19 }
  0x9f   : > { %s477_s3 = sshll.u32 %s471_s2, 4  ;;  %s4197_s5 = scalar_lea.hbm %s4595_s13, 768  ;;  %s4597_s3 = int_to_ptr.vmem [resolvable:$true] %s477_s3 }
  0xa0   : > { %p4198_p7 = scmp.ne.s32.totalorder %s4595_s13, %s4197_s5  ;;  %p4199_p12 = pneg %p4588_p10 }
  0xa1   : > { %s4202_s20 = scalar_lea.hbm %s4880_s0, 1536  ;;  %p4203_p2 = scmp.lt.s32.totalorder %s4595_s13, %s4880_s0 }
  0xa2   : > { %p4200_p13 = pnand %p4199_p12, %p4198_p7  ;;  %p4204_p6 = scmp.lt.s32.totalorder %s4202_s20, %s4197_s5 }
  0xa4   : > { %p4201_p0 = pneg %p4200_p13  ;;  %p4205_p5 = por %p4204_p6, %p4203_p2 }
  0xa6   : > { %p4206_p4 = pnand %p4205_p5, %p4201_p0 }
  0xa8   : > { %4209 = shalt.err (!%p4206_p4)
}
  0xa9   : > { %s4210_s2 = scalar_lea.vmem %s4597_s3, 768  ;;  %s4327_s19 = smov [#allocation2]  }
  0xaa   : > { %p4211_p1 = scmp.ne.s32.totalorder %s4597_s3, %s4210_s2  ;;  %s4215_s1 = sshll.u32 %s4327_s19, 4  ;;  %s4216_s1 = int_to_ptr.vmem [resolvable:$false] %s4215_s1 }
  0xab   : > { %s4217_s6 = scalar_lea.vmem %s4216_s1, 1536  ;;  %p4218_p13 = scmp.lt.s32.totalorder %s4597_s3, %s4216_s1 }
  0xac   : > { %p4213_p11 = pnand %p4211_p1, %p4199_p12  ;;  %p4219_p9 = scmp.lt.s32.totalorder %s4217_s6, %s4210_s2 }
  0xae   : > { %p4214_p7 = pneg %p4213_p11  ;;  %p4220_p8 = por %p4219_p9, %p4218_p13 }
  0xb0   : > { %p4221_p3 = pnand %p4220_p8, %p4214_p7 }
  0xb2   : > { %4224 = shalt.err (!%p4221_p3)
}
  0xb3   : > { %s4925_s5 = smov 8   ;;  %s4926_s7 = smov 128  }
  0xb4   : > { %3480 = dma.hbm_to_vmem [thread:$0]  (!%p4588_p10), %s4595_s13, 768, %s4597_s3, %s4599_s4, %s4917_s18, %s4926_s7, %s4925_s5  }
  0xb5   : > { %p4927_p1 = scmp.ne.s32.totalorder %s4909_s28, 0 }
  0xb6   : > { %s4626_s30 = sand.u32 (!%p4927_p1), 1, %s4301_s22   ;;  %p4928_p3 = scmp.ne.s32.totalorder (!%p4927_p1), %s4921_s25, 0 }
  0xb7   : > { %489 = sbr.rel (%p4927_p1) target bundleno = 2900 (0xb54), region = 68  ;;  %s492_s15 = scalar_lea.sflag (!%p4927_p1), [#allocation3], %s4626_s30 }
  0xb8   : > { %s3401_s20 = smul.u32 (!%p4927_p1), 48, %s4626_s30 }
  0xba   : > { %s4632_s29 = scalar_lea.vmem (!%p4927_p1), [#allocation2], %s3401_s20 }
  0xbc   : > { %4268 = dma.done.wait (%p4928_p3), %s492_s15, 768  }
  0xbd   : > { %4270 = vsyncadd (%p4928_p3), %s492_s15, 4294966528  ;;  %p4929_p8 = scmp.eq.s32.totalorder %s4421_s27, 0 }
  0xbf   : > { %4272 = dma.done.wait (%p4929_p8), [#allocation6], 2432   ;;  %p4930_p9 = pmov %p4929_p8 }
  0xc0   : > { %p4931_p11 = pmov %p4929_p8 }
  0xc1   : > { %4274 = vsyncadd (%p4930_p9), [#allocation6], 4294964864 }
  0xc2   : > { %4276 = dma.done.wait (%p4931_p11), [#allocation9], 3072   ;;  %p4932_p10 = pmov %p4929_p8 }
  0xc3   : > { %p4933_p12 = pmov %p4929_p8 }
  0xc4   : > { %4278 = vsyncadd (%p4932_p10), [#allocation9], 4294964224 }
  0xc5   : > { %4280 = dma.done.wait (%p4933_p12), [#allocation12], 17920   ;;  %p4934_p0 = pmov %p4929_p8 }
  0xc7   : > { %4282 = vsyncadd (%p4934_p0), [#allocation12], 4294949376  ;;  %p4935_p2 = pmov %p4934_p0 }
  0xc8   : > { %p4936_p6 = pmov %p4934_p0 }
  0xc9   : > { %4284 = dma.done.wait (%p4935_p2), [#allocation15], 12288  }
  0xca   : > { %4286 = vsyncadd (%p4936_p6), [#allocation15], 4294955008  ;;  %p4937_p5 = pmov %p4934_p0 }
  0xcb   : > { %p4938_p4 = pmov %p4934_p0 }
  0xcc   : > { %4288 = dma.done.wait (%p4937_p5), [#allocation18], 2432  }
  0xcd   : > { %4290 = vsyncadd (%p4938_p4), [#allocation18], 4294964864  ;;  %v4328_v0 = vmov 0.0   ;;  %vm4329_vm0 = vmmov 0   ;;  %v581_v1 = vld [vmem:[%s4632_s29 + $0x20] sm:$0xff]  ;;  %v582_v2 = vld [vmem:[%s4632_s29 + $0x28] sm:$0xff] }
  0xce   : > { %3364 = vmatprep.subr.bf16.mxu0 %v4328_v0  ;;  %3370 = vmatprep.mubr.msk.bf16.mxu0 %vm4329_vm0, %v4328_v0  ;;  %v579_v3 = vld [vmem:[%s4632_s29 + $0x10] sm:$0xff]  ;;  %v591_v4 = vpack.c.bf16 %v582_v2, %v581_v1  ;;  %v580_v5 = vld [vmem:[%s4632_s29 + $0x18] sm:$0xff]  ;;  %v577_v7 = vld [vmem:[%s4632_s29] sm:$0xff]  ;;  %vm607_vm1 = vcmask 392192   ;;  %v4330_v29 = vmov 0   ;;  %s4817_s28 = scalar_lea.vmem [#allocation20], %s3401_s20 }
  0xcf   : > { %v590_v6 = vpack.c.bf16 %v580_v5, %v579_v3  ;;  %v578_v8 = vld [vmem:[%s4632_s29 + $0x8] sm:$0xff]  ;;  %v3561_v15 = vld [vmem:[#allocation7] sm:$0xff]   ;;  %v3563_v25 = vld [vmem:[#allocation7 + $0x10] sm:$0xff]   ;;  %805 = vmatprep.mubr.bf16.mxu1 %v4330_v29  ;;  %s2925_s18 = sshll.u32 %s4817_s28, 4  ;;  %s3315_s25 = sshll.u32 %s4421_s27, 7  ;;  %s4829_s18 = int_to_ptr.vmem [resolvable:$true] %s2925_s18 }
  0xd0   : > { %3365 = vmatpush3.bf16.msra.mxu0 %v591_v4  ;;  %v3564_v9 = vld [vmem:[#allocation5 + $0x74] ss:$8 sps:$4 sm:$0xff]   ;;  %v3566_v10 = vld [vmem:[#allocation5 + $0x70] ss:$8 sps:$4 sm:$0xff]   ;;  %v589_v11 = vpack.c.bf16 %v578_v8, %v577_v7  ;;  %v3567_v12 = vld [vmem:[#allocation5 + $0x64] ss:$8 sps:$4 sm:$0xff]   ;;  %s4835_s19 = scalar_lea.hbm %s4892_s12, %s3315_s25 }
  0xd1   : > { %3366 = vmatprep.subr.bf16.mxu0 %v4328_v0  ;;  %773 = vmatprep.subr.bf16.mxu1 %v3564_v9  ;;  %v3569_v13 = vld [vmem:[#allocation5 + $0x60] ss:$8 sps:$4 sm:$0xff]   ;;  %v3570_v14 = vld [vmem:[#allocation5 + $0x54] ss:$8 sps:$4 sm:$0xff]   ;;  %v3572_v16 = vld [vmem:[#allocation5 + $0x50] ss:$8 sps:$4 sm:$0xff]  }
  0xd2   : > { %774 = vmatpush1.bf16.msra.mxu1 %v3566_v10  ;;  %v3573_v17 = vld [vmem:[#allocation5 + $0x44] ss:$8 sps:$4 sm:$0xff]   ;;  %v3575_v18 = vld [vmem:[#allocation5 + $0x40] ss:$8 sps:$4 sm:$0xff]   ;;  %v3576_v19 = vld [vmem:[#allocation5 + $0x34] ss:$8 sps:$4 sm:$0xff]  }
  0xd3   : > { %775 = vmatprep.subr.bf16.mxu1 %v3567_v12  ;;  %v3562_v20 = vld [vmem:[#allocation7 + $0x8] sm:$0xff]   ;;  %v3578_v21 = vld [vmem:[#allocation5 + $0x30] ss:$8 sps:$4 sm:$0xff]   ;;  %v3582_v24 = vld [vmem:[#allocation5 + $0x14] ss:$8 sps:$4 sm:$0xff]   ;;  %s2913_s1 = scalar_lea.sflag [#allocation4], %s4626_s30 }
  0xd4   : > { %3367 = vmatpush3.bf16.msra.mxu0 %v590_v6  ;;  %v3579_v22 = vld [vmem:[#allocation5 + $0x24] ss:$8 sps:$4 sm:$0xff]   ;;  %v3581_v23 = vld [vmem:[#allocation5 + $0x20] ss:$8 sps:$4 sm:$0xff]   ;;  %v3584_v26 = vld [vmem:[#allocation5 + $0x10] ss:$8 sps:$4 sm:$0xff]  }
  0xd5   : > { %3368 = vmatprep.subr.bf16.mxu0 %v4328_v0  ;;  %v3585_v27 = vld [vmem:[#allocation5 + $0x4] ss:$8 sps:$4 sm:$0xff]   ;;  %v3587_v28 = vld [vmem:[#allocation5] ss:$8 sps:$4 sm:$0xff]   ;;  %s4225_s6 = scalar_lea.vmem %s4829_s18, 768  ;;  %p4939_p13 = scmp.ne.s32.totalorder %s4922_s17, 0 }
  0xd6   : > { %776 = vmatpush1.bf16.msra.mxu1 %v3569_v13  ;;  %v3588_v30 = vld [vmem:[#allocation11 + $0x70] ss:$8 sps:$4 sm:$0xff]   ;;  %v3590_v31 = vld [vmem:[#allocation11 + $0x74] ss:$8 sps:$4 sm:$0xff]   ;;  %v3593_v32 = vld [vmem:[#allocation11 + $0x64] ss:$8 sps:$4 sm:$0xff]   ;;  %p4226_p7 = scmp.ne.s32.totalorder %s4829_s18, %s4225_s6 }
  0xd7   : > { %777 = vmatprep.subr.bf16.mxu1 %v3570_v14  ;;  %v3591_v33 = vld [vmem:[#allocation11 + $0x60] ss:$8 sps:$4 sm:$0xff]   ;;  %v3596_v34 = vld [vmem:[#allocation11 + $0x54] ss:$8 sps:$4 sm:$0xff]   ;;  %v3594_v35 = vld [vmem:[#allocation11 + $0x50] ss:$8 sps:$4 sm:$0xff]  }
  0xd8   : > { %3369 = vmatpush3.bf16.msra.mxu0 %v589_v11  ;;  %v3599_v36 = vld [vmem:[#allocation11 + $0x44] ss:$8 sps:$4 sm:$0xff]   ;;  %v3597_v37 = vld [vmem:[#allocation11 + $0x40] ss:$8 sps:$4 sm:$0xff]   ;;  %v3602_v38 = vld [vmem:[#allocation11 + $0x34] ss:$8 sps:$4 sm:$0xff]   ;;  %p4227_p1 = pnand %p4226_p7, %p4939_p13 }
  0xd9   : > { %1094 = vmatprep.subr.bf16.mxu0 %v3590_v31  ;;  %v3600_v39 = vld [vmem:[#allocation11 + $0x30] ss:$8 sps:$4 sm:$0xff]   ;;  %v3605_v40 = vld [vmem:[#allocation11 + $0x24] ss:$8 sps:$4 sm:$0xff]   ;;  %v3603_v41 = vld [vmem:[#allocation11 + $0x20] ss:$8 sps:$4 sm:$0xff]  }
  0xda   : > { %778 = vmatpush1.bf16.msra.mxu1 %v3572_v16  ;;  %v3608_v42 = vld [vmem:[#allocation11 + $0x14] ss:$8 sps:$4 sm:$0xff]   ;;  %v3606_v43 = vld [vmem:[#allocation11 + $0x10] ss:$8 sps:$4 sm:$0xff]   ;;  %v3611_v44 = vld [vmem:[#allocation11 + $0x4] ss:$8 sps:$4 sm:$0xff]   ;;  %p4228_p3 = pneg %p4227_p1 }
  0xdb   : > { %3371 = vmatmul.mubr.msk.bf16.vlgmr.msra.gmra.mxu0 %vm607_vm1, %v3561_v15  ;;  %779 = vmatprep.subr.bf16.mxu1 %v3573_v17  ;;  %v3609_v45 = vld [vmem:[#allocation11] ss:$8 sps:$4 sm:$0xff]   ;;  %v3614_v46 = vld [vmem:[#allocation11 + $0xf4] ss:$8 sps:$4 sm:$0xff]   ;;  %v3612_v47 = vld [vmem:[#allocation11 + $0xf0] ss:$8 sps:$4 sm:$0xff]  }
  0xdc   : > { %3374 = vmatprep.mubr.msk.bf16.mxu0 %vm4329_vm0, %v4328_v0  ;;  %1095 = vmatpush1.bf16.msra.mxu0 %v3588_v30  ;;  %v3617_v63 = vld [vmem:[#allocation11 + $0xe4] ss:$8 sps:$4 sm:$0xff]   ;;  %v3615_v1 = vld [vmem:[#allocation11 + $0xe0] ss:$8 sps:$4 sm:$0xff]   ;;  %v3620_v2 = vld [vmem:[#allocation11 + $0xd4] ss:$8 sps:$4 sm:$0xff]  }
  0xdd   : > { %1096 = vmatprep.subr.bf16.mxu0 %v3593_v32  ;;  %v3618_v3 = vld [vmem:[#allocation11 + $0xd0] ss:$8 sps:$4 sm:$0xff]   ;;  %v3623_v4 = vld [vmem:[#allocation11 + $0xc4] ss:$8 sps:$4 sm:$0xff]   ;;  %v3621_v5 = vld [vmem:[#allocation11 + $0xc0] ss:$8 sps:$4 sm:$0xff]  }
  0xde   : > { %780 = vmatpush1.bf16.msra.mxu1 %v3575_v18  ;;  %v3626_v6 = vld [vmem:[#allocation11 + $0xb4] ss:$8 sps:$4 sm:$0xff]   ;;  %v3624_v7 = vld [vmem:[#allocation11 + $0xb0] ss:$8 sps:$4 sm:$0xff]   ;;  %v3629_v8 = vld [vmem:[#allocation11 + $0xa4] ss:$8 sps:$4 sm:$0xff]  }
  0xdf   : > { %781 = vmatprep.subr.bf16.mxu1 %v3576_v19  ;;  %v3627_v9 = vld [vmem:[#allocation11 + $0xa0] ss:$8 sps:$4 sm:$0xff]   ;;  %v3632_v10 = vld [vmem:[#allocation11 + $0x94] ss:$8 sps:$4 sm:$0xff]   ;;  %v3630_v11 = vld [vmem:[#allocation11 + $0x90] ss:$8 sps:$4 sm:$0xff]  }
  0xe0   : > { %1097 = vmatpush1.bf16.msra.mxu0 %v3591_v33  ;;  %v3635_v12 = vld [vmem:[#allocation11 + $0x84] ss:$8 sps:$4 sm:$0xff]   ;;  %v3633_v13 = vld [vmem:[#allocation11 + $0x80] ss:$8 sps:$4 sm:$0xff]   ;;  %v838_v19 = vld [vmem:[#allocation8 + $0x10] sm:$0xff]  ;;  %s4331_s27 = smov [#allocation20]  }
  0xe1   : > { %1098 = vmatprep.subr.bf16.mxu0 %v3596_v34  ;;  %v837_v15 = vld [vmem:[#allocation8 + $0x8] sm:$0xff]  ;;  %v836_v16 = vld [vmem:[#allocation8] sm:$0xff]  ;;  %v863_v30 = vld [vmem:[#allocation10 + $0x18] sm:$0xff]  ;;  %s4229_s5 = sshll.u32 %s4331_s27, 4  ;;  %s4230_s5 = int_to_ptr.vmem [resolvable:$false] %s4229_s5 }
  0xe2   : > { %782 = vmatpush1.bf16.msra.mxu1 %v3578_v21  ;;  %v861_v18 = vld [vmem:[#allocation10 + $0x8] sm:$0xff]  ;;  %s4231_s7 = scalar_lea.vmem %s4230_s5, 1536  ;;  %p4232_p8 = scmp.lt.s32.totalorder %s4829_s18, %s4230_s5 }
  0xe3   : > { %3375 = vmatmul.mubr.msk.bf16.gmra.mxu0 %vm607_vm1, %v3562_v20  ;;  %783 = vmatprep.subr.bf16.mxu1 %v3579_v22  ;;  %p4233_p9 = scmp.lt.s32.totalorder %s4231_s7, %s4225_s6 }
  0xe4   : > { %3378 = vmatprep.mubr.msk.bf16.mxu0 %vm4329_vm0, %v4328_v0  ;;  %1099 = vmatpush1.bf16.msra.mxu0 %v3594_v35  ;;  %v841_v35 = vld [vmem:[#allocation8 + $0x28] sm:$0xff] }
  0xe5   : > { %1100 = vmatprep.subr.bf16.mxu0 %v3599_v36  ;;  %p4234_p11 = por %p4233_p9, %p4232_p8 }
  0xe6   : > { %784 = vmatpush1.bf16.msra.mxu1 %v3581_v23  ;;  %v862_v23 = vld [vmem:[#allocation10 + $0x10] sm:$0xff] }
  0xe7   : > { %785 = vmatprep.subr.bf16.mxu1 %v3582_v24  ;;  %v839_v24 = vld [vmem:[#allocation8 + $0x18] sm:$0xff]  ;;  %p4235_p10 = pnand %p4234_p11, %p4228_p3 }
  0xe8   : > { %1101 = vmatpush1.bf16.msra.mxu0 %v3597_v37  ;;  %v840_v37 = vld [vmem:[#allocation8 + $0x20] sm:$0xff] }
  0xe9   : > { %1102 = vmatprep.subr.bf16.mxu0 %v3602_v38 }
  0xea   : > { %786 = vmatpush1.bf16.msra.mxu1 %v3584_v26 }
  0xeb   : > { %3379 = vmatmul.mubr.msk.bf16.gmra.mxu0 %vm607_vm1, %v3563_v25  ;;  %787 = vmatprep.subr.bf16.mxu1 %v3585_v27  ;;  %v860_v25 = vld [vmem:[#allocation10] sm:$0xff] }
  0xec   : > { %1103 = vmatpush1.bf16.msra.mxu0 %v3600_v39  ;;  %v865_v39 = vld [vmem:[#allocation10 + $0x28] sm:$0xff] }
  0xed   : > { %1104 = vmatprep.subr.bf16.mxu0 %v3605_v40  ;;  %v842_v40 = vld [vmem:[#allocation8 + $0x30] sm:$0xff] }
  0xee   : > { %788 = vmatpush1.bf16.msra.mxu1 %v3587_v28 }
  0xf0   : > { %1105 = vmatpush1.bf16.msra.mxu0 %v3603_v41 }
  0xf1   : > { %1106 = vmatprep.subr.bf16.mxu0 %v3608_v42 }
  0xf4   : > { %1107 = vmatpush1.bf16.msra.mxu0 %v3606_v43 }
  0xf5   : > { %1108 = vmatprep.subr.bf16.mxu0 %v3611_v44  ;;  %v866_v44 = vld [vmem:[#allocation10 + $0x30] sm:$0xff] }
  0xf8   : > { %1109 = vmatpush1.bf16.msra.mxu0 %v3609_v45  ;;  %v843_v45 = vld [vmem:[#allocation8 + $0x38] sm:$0xff] }
  0xf9   : > { %1110 = vmatprep.subr.bf16.mxu0 %v3614_v46  ;;  %v864_v46 = vld [vmem:[#allocation10 + $0x20] sm:$0xff] }
  0xfc   : > { %1111 = vmatpush2.bf16.msra.mxu0 %v3612_v47 }
  0xfd   : > { %1112 = vmatprep.subr.bf16.mxu0 %v3617_v63 }
 0x100   : > { %1113 = vmatpush2.bf16.msra.mxu0 %v3615_v1  ;;  %v870_v1 = vld [vmem:[#allocation10 + $0x50] sm:$0xff] }
 0x101   : > { %1114 = vmatprep.subr.bf16.mxu0 %v3620_v2  ;;  %v847_v2 = vld [vmem:[#allocation8 + $0x58] sm:$0xff] }
 0x104   : > { %1115 = vmatpush2.bf16.msra.mxu0 %v3618_v3  ;;  %v868_v3 = vld [vmem:[#allocation10 + $0x40] sm:$0xff] }
 0x105   : > { %1116 = vmatprep.subr.bf16.mxu0 %v3623_v4 }
 0x108   : > { %1117 = vmatpush2.bf16.msra.mxu0 %v3621_v5 }
 0x109   : > { %1118 = vmatprep.subr.bf16.mxu0 %v3626_v6 }
 0x10c   : > { %1119 = vmatpush2.bf16.msra.mxu0 %v3624_v7 }
 0x10d   : > { %1120 = vmatprep.subr.bf16.mxu0 %v3629_v8  ;;  %v871_v8 = vld [vmem:[#allocation10 + $0x58] sm:$0xff] }
 0x110   : > { %1121 = vmatpush2.bf16.msra.mxu0 %v3627_v9 }
 0x111   : > { %1122 = vmatprep.subr.bf16.mxu0 %v3632_v10 }
 0x114   : > { %1123 = vmatpush2.bf16.msra.mxu0 %v3630_v11 }
 0x115   : > { %1124 = vmatprep.subr.bf16.mxu0 %v3635_v12 }
 0x118   : > { %1125 = vmatpush2.bf16.msra.mxu0 %v3633_v13 }
 0x19b   : > { %v651_v48 = vpop.f32.mrf.mxu0 }
 0x19d   : > { %v3372_v49 = vpop.f32.mrf.mxu0 }
 0x19f   : > { %v654_v50 = vpop.f32.mrf.mxu0 }
 0x1a0   : > { %v674_v51 = vpack.c.bf16 %v654_v50, %v651_v48  ;;  %v867_v50 = vld [vmem:[#allocation10 + $0x38] sm:$0xff] }
 0x1a1   : > { %v3373_v52 = vpop.f32.mrf.mxu0 }
 0x1a2   : > { %806 = vmatmul.mubr.bf16.vlgmr.msra.gmra.mxu1 %v674_v51 }
 0x1a3   : > { %v659_v53 = vpop.f32.mrf.mxu0  ;;  %815 = vmatprep.mubr.bf16.mxu1 %v4330_v29 }
 0x1a5   : > { %v3376_v54 = vpop.f32.mrf.mxu0 }
 0x1a7   : > { %v662_v55 = vpop.f32.mrf.mxu0 }
 0x1a8   : > { %v675_v56 = vpack.c.bf16 %v662_v55, %v659_v53  ;;  %v845_v55 = vld [vmem:[#allocation8 + $0x48] sm:$0xff] }
 0x1a9   : > { %v3377_v57 = vpop.f32.mrf.mxu0 }
 0x1aa   : > { %816 = vmatmul.mubr.bf16.gmra.mxu1 %v675_v56  ;;  %v844_v57 = vld [vmem:[#allocation8 + $0x40] sm:$0xff] }
 0x1ab   : > { %v667_v58 = vpop.f32.mrf.mxu0  ;;  %825 = vmatprep.mubr.bf16.mxu1 %v4330_v29 }
 0x1ad   : > { %v3380_v59 = vpop.f32.mrf.mxu0 }
 0x1ae   : > { %v869_v59 = vld [vmem:[#allocation10 + $0x48] sm:$0xff] }
 0x1af   : > { %v670_v60 = vpop.f32.mrf.mxu0 }
 0x1b0   : > { %v676_v61 = vpack.c.bf16 %v670_v60, %v667_v58  ;;  %v846_v60 = vld [vmem:[#allocation8 + $0x50] sm:$0xff] }
 0x1b1   : > { %v3381_v62 = vpop.f32.mrf.mxu0 }
 0x1b2   : > { %826 = vmatmul.mubr.bf16.gmra.mxu1 %v676_v61 }
 0x1b3   : > { %1225 = vmatprep.mubr.bf16.mxu1 %v4330_v29 }
 0x262   : > { %v807_v14 = vpop.f32.mrf.mxu1 }
 0x263   : > { %v848_v21 = vmul.f32 %v836_v16, %v807_v14 }
 0x264   : > { %v809_v17 = vpop.f32.mrf.mxu1 }
 0x265   : > { %v849_v20 = vmul.f32 %v837_v15, %v809_v17  ;;  %v872_v33 = vadd.f32 %v860_v25, %v848_v21 }
 0x266   : > { %v811_v22 = vpop.f32.mrf.mxu1 }
 0x267   : > { %v873_v26 = vadd.f32 %v861_v18, %v849_v20  ;;  %v850_v27 = vmul.f32 %v838_v19, %v811_v22 }
 0x268   : > { %v813_v28 = vpop.f32.mrf.mxu1 }
 0x269   : > { %v874_v31 = vadd.f32 %v862_v23, %v850_v27  ;;  %v851_v32 = vmul.f32 %v839_v24, %v813_v28  ;;  %3811 = vtanh.f32 %v873_v26 }
 0x26a   : > { %v817_v34 = vpop.f32.mrf.mxu1 }
 0x26b   : > { %v875_v36 = vadd.f32 %v863_v30, %v851_v32  ;;  %3813 = vtanh.f32 %v874_v31  ;;  %v852_v42 = vmul.f32 %v840_v37, %v817_v34 }
 0x26c   : > { %v819_v38 = vpop.f32.mrf.mxu1 }
 0x26d   : > { %3815 = vtanh.f32 %v875_v36  ;;  %v853_v41 = vmul.f32 %v841_v35, %v819_v38  ;;  %v876_v53 = vadd.f32 %v864_v46, %v852_v42 }
 0x26e   : > { %3817 = vtanh.f32 %v872_v33  ;;  %v821_v43 = vpop.f32.mrf.mxu1 }
 0x26f   : > { %v877_v47 = vadd.f32 %v865_v39, %v853_v41  ;;  %v854_v48 = vmul.f32 %v842_v40, %v821_v43 }
 0x270   : > { %v823_v49 = vpop.f32.mrf.mxu1 }
 0x271   : > { %v878_v51 = vadd.f32 %v866_v44, %v854_v48  ;;  %v855_v52 = vmul.f32 %v843_v45, %v823_v49  ;;  %3819 = vtanh.f32 %v877_v47  ;;  %v3641_v48 = vld [vmem:[#allocation11 + $0x174] ss:$8 sps:$4 sm:$0xff]  }
 0x272   : > { %v827_v54 = vpop.f32.mrf.mxu1 }
 0x273   : > { %v879_v56 = vadd.f32 %v867_v50, %v855_v52  ;;  %3821 = vtanh.f32 %v878_v51  ;;  %v856_v62 = vmul.f32 %v844_v57, %v827_v54  ;;  %v3636_v50 = vld [vmem:[#allocation13] sm:$0xff]   ;;  %v3639_v51 = vld [vmem:[#allocation11 + $0x170] ss:$8 sps:$4 sm:$0xff]   ;;  %v3647_v54 = vld [vmem:[#allocation11 + $0x154] ss:$8 sps:$4 sm:$0xff]  }
 0x274   : > { %v829_v58 = vpop.f32.mrf.mxu1  ;;  %v3644_v52 = vld [vmem:[#allocation11 + $0x164] ss:$8 sps:$4 sm:$0xff]  }
 0x275   : > { %3823 = vtanh.f32 %v879_v56  ;;  %v857_v61 = vmul.f32 %v845_v55, %v829_v58  ;;  %v880_v13 = vadd.f32 %v868_v3, %v856_v62  ;;  %v3637_v55 = vld [vmem:[#allocation13 + $0x8] sm:$0xff]   ;;  %v3645_v56 = vld [vmem:[#allocation11 + $0x150] ss:$8 sps:$4 sm:$0xff]  }
 0x276   : > { %3825 = vtanh.f32 %v876_v53  ;;  %v831_v63 = vpop.f32.mrf.mxu1  ;;  %v4680_v6 = vpop.eup %3811  ;;  %v3642_v53 = vld [vmem:[#allocation11 + $0x160] ss:$8 sps:$4 sm:$0xff]   ;;  %v3650_v57 = vld [vmem:[#allocation11 + $0x144] ss:$8 sps:$4 sm:$0xff]  }
 0x277   : > { %v881_v4 = vadd.f32 %v869_v59, %v857_v61  ;;  %v858_v5 = vmul.f32 %v846_v60, %v831_v63  ;;  %v3648_v58 = vld [vmem:[#allocation11 + $0x140] ss:$8 sps:$4 sm:$0xff]   ;;  %v3653_v59 = vld [vmem:[#allocation11 + $0x134] ss:$8 sps:$4 sm:$0xff]   ;;  %v3651_v61 = vld [vmem:[#allocation11 + $0x130] ss:$8 sps:$4 sm:$0xff]  }
 0x278   : > { %v833_v7 = vpop.f32.mrf.mxu1  ;;  %v4682_v9 = vpop.eup %3813  ;;  %v3638_v60 = vld [vmem:[#allocation13 + $0x10] sm:$0xff]   ;;  %v3656_v62 = vld [vmem:[#allocation11 + $0x124] ss:$8 sps:$4 sm:$0xff]   ;;  %v3654_v63 = vld [vmem:[#allocation11 + $0x120] ss:$8 sps:$4 sm:$0xff]  }
 0x279   : > { %v882_v10 = vadd.f32 %v870_v1, %v858_v5  ;;  %v859_v11 = vmul.f32 %v847_v2, %v833_v7  ;;  %3827 = vtanh.f32 %v881_v4  ;;  %v3659_v1 = vld [vmem:[#allocation11 + $0x114] ss:$8 sps:$4 sm:$0xff]   ;;  %v3657_v2 = vld [vmem:[#allocation11 + $0x110] ss:$8 sps:$4 sm:$0xff]   ;;  %v3662_v3 = vld [vmem:[#allocation11 + $0x104] ss:$8 sps:$4 sm:$0xff]  }
 0x27a   : > { %v4684_v12 = vpop.eup %3815  ;;  %v3660_v4 = vld [vmem:[#allocation11 + $0x100] ss:$8 sps:$4 sm:$0xff]   ;;  %v3665_v5 = vld [vmem:[#allocation11 + $0x1f4] ss:$8 sps:$4 sm:$0xff]   ;;  %v3663_v7 = vld [vmem:[#allocation11 + $0x1f0] ss:$8 sps:$4 sm:$0xff]  }
 0x27b   : > { %v4686_v14 = vpop.eup %3817  ;;  %v883_v15 = vadd.f32 %v871_v8, %v859_v11  ;;  %v897_v16 = vpack.c.bf16 %v4684_v12, %v4680_v6  ;;  %3829 = vtanh.f32 %v882_v10  ;;  %v3668_v8 = vld [vmem:[#allocation11 + $0x1e4] ss:$8 sps:$4 sm:$0xff]   ;;  %v3666_v10 = vld [vmem:[#allocation11 + $0x1e0] ss:$8 sps:$4 sm:$0xff]   ;;  %v3671_v11 = vld [vmem:[#allocation11 + $0x1d4] ss:$8 sps:$4 sm:$0xff]  }
 0x27c   : > { %v896_v17 = vpack.c.bf16 %v4682_v9, %v4686_v14 }
 0x27d   : > { %3831 = vtanh.f32 %v883_v15  ;;  %1126 = vmatprep.mubr.bf16.mxu0 %v897_v16  ;;  %v3674_v15 = vld [vmem:[#allocation11 + $0x1c4] ss:$8 sps:$4 sm:$0xff]   ;;  %v3672_v16 = vld [vmem:[#allocation11 + $0x1c0] ss:$8 sps:$4 sm:$0xff]  }
 0x27e   : > { %3833 = vtanh.f32 %v880_v13  ;;  %1127 = vmatmul.mubr.bf16.vlgmr.msra.gmra.mxu0 %v896_v17  ;;  %v4692_v18 = vpop.eup %3819  ;;  %v3669_v13 = vld [vmem:[#allocation11 + $0x1d0] ss:$8 sps:$4 sm:$0xff]   ;;  %v3677_v17 = vld [vmem:[#allocation11 + $0x1b4] ss:$8 sps:$4 sm:$0xff]  }
 0x280   : > { %v4694_v19 = vpop.eup %3821 }
 0x282   : > { %v4696_v20 = vpop.eup %3823 }
 0x283   : > { %v4698_v21 = vpop.eup %3825  ;;  %v899_v22 = vpack.c.bf16 %v4696_v20, %v4692_v18 }
 0x284   : > { %v898_v23 = vpack.c.bf16 %v4694_v19, %v4698_v21 }
 0x285   : > { %1136 = vmatprep.mubr.bf16.mxu0 %v899_v22  ;;  %v3675_v22 = vld [vmem:[#allocation11 + $0x1b0] ss:$8 sps:$4 sm:$0xff]  }
 0x286   : > { %1137 = vmatmul.mubr.bf16.gmra.mxu0 %v898_v23  ;;  %v4704_v24 = vpop.eup %3827  ;;  %v3680_v23 = vld [vmem:[#allocation11 + $0x1a4] ss:$8 sps:$4 sm:$0xff]  }
 0x288   : > { %v4706_v25 = vpop.eup %3829 }
 0x28a   : > { %v4708_v26 = vpop.eup %3831 }
 0x28b   : > { %v4710_v27 = vpop.eup %3833  ;;  %v901_v28 = vpack.c.bf16 %v4708_v26, %v4704_v24 }
 0x28c   : > { %v900_v30 = vpack.c.bf16 %v4706_v25, %v4710_v27 }
 0x28d   : > { %1146 = vmatprep.mubr.bf16.mxu0 %v901_v28  ;;  %v3678_v28 = vld [vmem:[#allocation11 + $0x1a0] ss:$8 sps:$4 sm:$0xff]  }
 0x28e   : > { %1147 = vmatmul.mubr.bf16.gmra.mxu0 %v900_v30  ;;  %v3683_v30 = vld [vmem:[#allocation11 + $0x194] ss:$8 sps:$4 sm:$0xff]  }
 0x28f   : > { %1647 = vmatprep.mubr.bf16.mxu0 %v4330_v29 }
 0x33e   : > { %v1128_v31 = vpop.f32.mrf.mxu0 }
 0x340   : > { %v1130_v32 = vpop.f32.mrf.mxu0 }
 0x342   : > { %v1132_v33 = vpop.f32.mrf.mxu0 }
 0x343   : > { %v1163_v49 = vpack.c.bf16 %v1132_v33, %v1128_v31  ;;  %v3681_v31 = vld [vmem:[#allocation11 + $0x190] ss:$8 sps:$4 sm:$0xff]   ;;  %v3684_v33 = vld [vmem:[#allocation11 + $0x180] ss:$8 sps:$4 sm:$0xff]  }
 0x344   : > { %v1134_v34 = vpop.f32.mrf.mxu0 }
 0x345   : > { %v1164_v47 = vpack.c.bf16 %v1134_v34, %v1130_v32  ;;  %v3686_v32 = vld [vmem:[#allocation11 + $0x184] ss:$8 sps:$4 sm:$0xff]  }
 0x346   : > { %v1138_v35 = vpop.f32.mrf.mxu0 }
 0x348   : > { %v1140_v36 = vpop.f32.mrf.mxu0 }
 0x34a   : > { %v1142_v37 = vpop.f32.mrf.mxu0 }
 0x34b   : > { %v1165_v46 = vpack.c.bf16 %v1142_v37, %v1138_v35  ;;  %v1257_v35 = vld [vmem:[#allocation14 + $0x8] sm:$0xff] }
 0x34c   : > { %v1144_v38 = vpop.f32.mrf.mxu0 }
 0x34d   : > { %v1166_v45 = vpack.c.bf16 %v1144_v38, %v1140_v36  ;;  %v1256_v36 = vld [vmem:[#allocation14] sm:$0xff]  ;;  %v1281_v38 = vld [vmem:[#allocation16 + $0x8] sm:$0xff] }
 0x34e   : > { %v1148_v39 = vpop.f32.mrf.mxu0 }
 0x350   : > { %v1150_v40 = vpop.f32.mrf.mxu0 }
 0x352   : > { %v1152_v41 = vpop.f32.mrf.mxu0 }
 0x353   : > { %v1167_v44 = vpack.c.bf16 %v1152_v41, %v1148_v39  ;;  %v1258_v39 = vld [vmem:[#allocation14 + $0x10] sm:$0xff] }
 0x354   : > { %v1154_v42 = vpop.f32.mrf.mxu0 }
 0x355   : > { %v1168_v43 = vpack.c.bf16 %v1154_v42, %v1150_v40 }
 0x357   : > { %1203 = vmatprep.subr.bf16.mxu1 %v1168_v43  ;;  %v1282_v43 = vld [vmem:[#allocation16 + $0x10] sm:$0xff] }
 0x358   : > { %1204 = vmatpush1.bf16.msra.mxu1 %v1167_v44  ;;  %v1259_v44 = vld [vmem:[#allocation14 + $0x18] sm:$0xff] }
 0x359   : > { %1205 = vmatprep.subr.bf16.mxu1 %v1166_v45  ;;  %v1280_v45 = vld [vmem:[#allocation16] sm:$0xff] }
 0x35c   : > { %1206 = vmatpush1.bf16.msra.mxu1 %v1165_v46 }
 0x35d   : > { %1207 = vmatprep.subr.bf16.mxu1 %v1164_v47 }
 0x360   : > { %1208 = vmatpush1.bf16.msra.mxu1 %v1163_v49  ;;  %v1283_v49 = vld [vmem:[#allocation16 + $0x18] sm:$0xff] }
 0x361   : > { %1515 = vmatprep.subr.bf16.mxu1 %v3641_v48 }
 0x363   : > { %3175 = vmatmul.mubr.msk.bf16.vlgmr.msra.gmra.mxu1 %vm607_vm1, %v3636_v50 }
 0x364   : > { %1235 = vmatprep.mubr.bf16.mxu1 %v4330_v29  ;;  %1516 = vmatpush1.bf16.msra.mxu1 %v3639_v51 }
 0x365   : > { %1517 = vmatprep.subr.bf16.mxu1 %v3644_v52 }
 0x368   : > { %1518 = vmatpush1.bf16.msra.mxu1 %v3642_v53 }
 0x369   : > { %1519 = vmatprep.subr.bf16.mxu1 %v3647_v54  ;;  %v1261_v54 = vld [vmem:[#allocation14 + $0x28] sm:$0xff] }
 0x36b   : > { %3176 = vmatmul.mubr.msk.bf16.gmra.mxu1 %vm607_vm1, %v3637_v55 }
 0x36c   : > { %1245 = vmatprep.mubr.bf16.mxu1 %v4330_v29  ;;  %1520 = vmatpush1.bf16.msra.mxu1 %v3645_v56  ;;  %v1260_v56 = vld [vmem:[#allocation14 + $0x20] sm:$0xff] }
 0x36d   : > { %1521 = vmatprep.subr.bf16.mxu1 %v3650_v57 }
 0x370   : > { %1522 = vmatpush1.bf16.msra.mxu1 %v3648_v58  ;;  %v1285_v58 = vld [vmem:[#allocation16 + $0x28] sm:$0xff] }
 0x371   : > { %1523 = vmatprep.subr.bf16.mxu1 %v3653_v59  ;;  %v1262_v59 = vld [vmem:[#allocation14 + $0x30] sm:$0xff] }
 0x373   : > { %3177 = vmatmul.mubr.msk.bf16.gmra.mxu1 %vm607_vm1, %v3638_v60 }
 0x374   : > { %1524 = vmatpush1.bf16.msra.mxu1 %v3651_v61 }
 0x375   : > { %1525 = vmatprep.subr.bf16.mxu1 %v3656_v62 }
 0x378   : > { %1526 = vmatpush1.bf16.msra.mxu1 %v3654_v63  ;;  %v1286_v63 = vld [vmem:[#allocation16 + $0x30] sm:$0xff] }
 0x379   : > { %1527 = vmatprep.subr.bf16.mxu1 %v3659_v1  ;;  %v1263_v1 = vld [vmem:[#allocation14 + $0x38] sm:$0xff] }
 0x37c   : > { %1528 = vmatpush1.bf16.msra.mxu1 %v3657_v2  ;;  %v1284_v2 = vld [vmem:[#allocation16 + $0x20] sm:$0xff] }
 0x37d   : > { %1529 = vmatprep.subr.bf16.mxu1 %v3662_v3 }
 0x380   : > { %1530 = vmatpush1.bf16.msra.mxu1 %v3660_v4 }
 0x381   : > { %1531 = vmatprep.subr.bf16.mxu1 %v3665_v5 }
 0x384   : > { %1532 = vmatpush2.bf16.msra.mxu1 %v3663_v7  ;;  %v1287_v7 = vld [vmem:[#allocation16 + $0x38] sm:$0xff] }
 0x385   : > { %1533 = vmatprep.subr.bf16.mxu1 %v3668_v8 }
 0x388   : > { %1534 = vmatpush2.bf16.msra.mxu1 %v3666_v10 }
 0x389   : > { %1535 = vmatprep.subr.bf16.mxu1 %v3671_v11 }
 0x38c   : > { %1536 = vmatpush2.bf16.msra.mxu1 %v3669_v13 }
 0x38d   : > { %1537 = vmatprep.subr.bf16.mxu1 %v3674_v15  ;;  %v1265_v15 = vld [vmem:[#allocation14 + $0x48] sm:$0xff] }
 0x390   : > { %1538 = vmatpush2.bf16.msra.mxu1 %v3672_v16 }
 0x391   : > { %1539 = vmatprep.subr.bf16.mxu1 %v3677_v17  ;;  %v1264_v17 = vld [vmem:[#allocation14 + $0x40] sm:$0xff] }
 0x394   : > { %1540 = vmatpush2.bf16.msra.mxu1 %v3675_v22 }
 0x395   : > { %1541 = vmatprep.subr.bf16.mxu1 %v3680_v23  ;;  %v1289_v23 = vld [vmem:[#allocation16 + $0x48] sm:$0xff] }
 0x398   : > { %1542 = vmatpush2.bf16.msra.mxu1 %v3678_v28  ;;  %v1266_v28 = vld [vmem:[#allocation14 + $0x50] sm:$0xff] }
 0x399   : > { %1543 = vmatprep.subr.bf16.mxu1 %v3683_v30 }
 0x39c   : > { %1544 = vmatpush2.bf16.msra.mxu1 %v3681_v31 }
 0x39d   : > { %1545 = vmatprep.subr.bf16.mxu1 %v3686_v32 }
 0x3a0   : > { %1546 = vmatpush2.bf16.msra.mxu1 %v3684_v33  ;;  %v1290_v33 = vld [vmem:[#allocation16 + $0x50] sm:$0xff] }
 0x423   : > { %v1227_v34 = vpop.f32.mrf.mxu1 }
 0x424   : > { %v1268_v41 = vmul.f32 %v1256_v36, %v1227_v34  ;;  %v1267_v34 = vld [vmem:[#allocation14 + $0x58] sm:$0xff] }
 0x425   : > { %v1229_v37 = vpop.f32.mrf.mxu1 }
 0x426   : > { %v1269_v40 = vmul.f32 %v1257_v35, %v1229_v37  ;;  %v1292_v52 = vadd.f32 %v1280_v45, %v1268_v41  ;;  %v1288_v35 = vld [vmem:[#allocation16 + $0x40] sm:$0xff] }
 0x427   : > { %v1231_v42 = vpop.f32.mrf.mxu1 }
 0x428   : > { %v1293_v46 = vadd.f32 %v1281_v38, %v1269_v40  ;;  %v1270_v47 = vmul.f32 %v1258_v39, %v1231_v42  ;;  %v1291_v40 = vld [vmem:[#allocation16 + $0x58] sm:$0xff] }
 0x429   : > { %v1233_v48 = vpop.f32.mrf.mxu1 }
 0x42a   : > { %v1294_v50 = vadd.f32 %v1282_v43, %v1270_v47  ;;  %v1271_v51 = vmul.f32 %v1259_v44, %v1233_v48  ;;  %3835 = vtanh.f32 %v1293_v46 }
 0x42b   : > { %v1237_v53 = vpop.f32.mrf.mxu1 }
 0x42c   : > { %v1295_v55 = vadd.f32 %v1283_v49, %v1271_v51  ;;  %3837 = vtanh.f32 %v1294_v50  ;;  %v1272_v61 = vmul.f32 %v1260_v56, %v1237_v53 }
 0x42d   : > { %v1239_v57 = vpop.f32.mrf.mxu1 }
 0x42e   : > { %3839 = vtanh.f32 %v1295_v55  ;;  %v1273_v60 = vmul.f32 %v1261_v54, %v1239_v57  ;;  %v1296_v11 = vadd.f32 %v1284_v2, %v1272_v61 }
 0x42f   : > { %3841 = vtanh.f32 %v1292_v52  ;;  %v1241_v62 = vpop.f32.mrf.mxu1 }
 0x430   : > { %v1297_v3 = vadd.f32 %v1285_v58, %v1273_v60  ;;  %v1274_v4 = vmul.f32 %v1262_v59, %v1241_v62 }
 0x431   : > { %v1243_v5 = vpop.f32.mrf.mxu1 }
 0x432   : > { %v1298_v8 = vadd.f32 %v1286_v63, %v1274_v4  ;;  %v1275_v10 = vmul.f32 %v1263_v1, %v1243_v5  ;;  %3843 = vtanh.f32 %v1297_v3 }
 0x433   : > { %v1247_v13 = vpop.f32.mrf.mxu1 }
 0x434   : > { %v1299_v16 = vadd.f32 %v1287_v7, %v1275_v10  ;;  %3845 = vtanh.f32 %v1298_v8  ;;  %v1276_v31 = vmul.f32 %v1264_v17, %v1247_v13 }
 0x435   : > { %v1249_v22 = vpop.f32.mrf.mxu1 }
 0x436   : > { %3847 = vtanh.f32 %v1299_v16  ;;  %v1277_v30 = vmul.f32 %v1265_v15, %v1249_v22  ;;  %v1300_v45 = vadd.f32 %v1288_v35, %v1276_v31  ;;  %v3687_v31 = vld [vmem:[#allocation13 + $0x18] sm:$0xff]  }
 0x437   : > { %3849 = vtanh.f32 %v1296_v11  ;;  %v1251_v32 = vpop.f32.mrf.mxu1  ;;  %v3836_v38 = vpop.eup %3835  ;;  %v3698_v35 = vld [vmem:[#allocation11 + $0x254] ss:$8 sps:$4 sm:$0xff]  }
 0x438   : > { %v1301_v36 = vadd.f32 %v1289_v23, %v1277_v30  ;;  %v1278_v37 = vmul.f32 %v1266_v28, %v1251_v32  ;;  %v3692_v28 = vld [vmem:[#allocation11 + $0x274] ss:$8 sps:$4 sm:$0xff]   ;;  %v3690_v32 = vld [vmem:[#allocation11 + $0x270] ss:$8 sps:$4 sm:$0xff]  }
 0x439   : > { %v1253_v39 = vpop.f32.mrf.mxu1  ;;  %v3838_v41 = vpop.eup %3837 }
 0x43a   : > { %v1302_v42 = vadd.f32 %v1290_v33, %v1278_v37  ;;  %v1279_v43 = vmul.f32 %v1267_v34, %v1253_v39  ;;  %3851 = vtanh.f32 %v1301_v36  ;;  %v3695_v33 = vld [vmem:[#allocation11 + $0x264] ss:$8 sps:$4 sm:$0xff]   ;;  %v3693_v34 = vld [vmem:[#allocation11 + $0x260] ss:$8 sps:$4 sm:$0xff]   ;;  %v3696_v37 = vld [vmem:[#allocation11 + $0x250] ss:$8 sps:$4 sm:$0xff]  }
 0x43b   : > { %v3840_v44 = vpop.eup %3839  ;;  %v3688_v36 = vld [vmem:[#allocation13 + $0x20] sm:$0xff]  }
 0x43c   : > { %v3842_v46 = vpop.eup %3841  ;;  %v1303_v47 = vadd.f32 %v1291_v40, %v1279_v43  ;;  %v1317_v48 = vpack.c.bf16 %v3840_v44, %v3836_v38  ;;  %3853 = vtanh.f32 %v1302_v42  ;;  %v3701_v38 = vld [vmem:[#allocation11 + $0x244] ss:$8 sps:$4 sm:$0xff]   ;;  %v3699_v39 = vld [vmem:[#allocation11 + $0x240] ss:$8 sps:$4 sm:$0xff]   ;;  %v3704_v40 = vld [vmem:[#allocation11 + $0x234] ss:$8 sps:$4 sm:$0xff]  }
 0x43d   : > { %v1316_v49 = vpack.c.bf16 %v3838_v41, %v3842_v46  ;;  %v3689_v41 = vld [vmem:[#allocation13 + $0x28] sm:$0xff]   ;;  %v3702_v42 = vld [vmem:[#allocation11 + $0x230] ss:$8 sps:$4 sm:$0xff]  }
 0x43e   : > { %3855 = vtanh.f32 %v1303_v47  ;;  %1547 = vmatprep.mubr.bf16.mxu1 %v1317_v48  ;;  %v3707_v43 = vld [vmem:[#allocation11 + $0x224] ss:$8 sps:$4 sm:$0xff]   ;;  %v3705_v44 = vld [vmem:[#allocation11 + $0x220] ss:$8 sps:$4 sm:$0xff]   ;;  %v3708_v46 = vld [vmem:[#allocation11 + $0x210] ss:$8 sps:$4 sm:$0xff]  }
 0x43f   : > { %3857 = vtanh.f32 %v1300_v45  ;;  %1548 = vmatmul.mubr.bf16.vlgmr.msra.gmra.mxu1 %v1316_v49  ;;  %v3844_v50 = vpop.eup %3843  ;;  %v3710_v45 = vld [vmem:[#allocation11 + $0x214] ss:$8 sps:$4 sm:$0xff]   ;;  %v3713_v47 = vld [vmem:[#allocation11 + $0x204] ss:$8 sps:$4 sm:$0xff]   ;;  %v3711_v48 = vld [vmem:[#allocation11 + $0x200] ss:$8 sps:$4 sm:$0xff]  }
 0x440   : > { %v3716_v49 = vld [vmem:[#allocation11 + $0x2f4] ss:$8 sps:$4 sm:$0xff]  }
 0x441   : > { %v3846_v51 = vpop.eup %3845 }
 0x443   : > { %v3848_v52 = vpop.eup %3847 }
 0x444   : > { %v3850_v53 = vpop.eup %3849  ;;  %v1319_v54 = vpack.c.bf16 %v3848_v52, %v3844_v50  ;;  %v3714_v50 = vld [vmem:[#allocation11 + $0x2f0] ss:$8 sps:$4 sm:$0xff]   ;;  %v3717_v52 = vld [vmem:[#allocation11 + $0x2e0] ss:$8 sps:$4 sm:$0xff]  }
 0x445   : > { %v1318_v55 = vpack.c.bf16 %v3846_v51, %v3850_v53  ;;  %v3719_v51 = vld [vmem:[#allocation11 + $0x2e4] ss:$8 sps:$4 sm:$0xff]   ;;  %v3722_v53 = vld [vmem:[#allocation11 + $0x2d4] ss:$8 sps:$4 sm:$0xff]  }
 0x446   : > { %1557 = vmatprep.mubr.bf16.mxu1 %v1319_v54  ;;  %v3720_v54 = vld [vmem:[#allocation11 + $0x2d0] ss:$8 sps:$4 sm:$0xff]  }
 0x447   : > { %1558 = vmatmul.mubr.bf16.gmra.mxu1 %v1318_v55  ;;  %v3852_v56 = vpop.eup %3851  ;;  %v3725_v55 = vld [vmem:[#allocation11 + $0x2c4] ss:$8 sps:$4 sm:$0xff]  }
 0x449   : > { %v3854_v57 = vpop.eup %3853 }
 0x44b   : > { %v3856_v58 = vpop.eup %3855 }
 0x44c   : > { %v3858_v59 = vpop.eup %3857  ;;  %v1321_v60 = vpack.c.bf16 %v3856_v58, %v3852_v56  ;;  %v3723_v56 = vld [vmem:[#allocation11 + $0x2c0] ss:$8 sps:$4 sm:$0xff]   ;;  %v3726_v58 = vld [vmem:[#allocation11 + $0x2b0] ss:$8 sps:$4 sm:$0xff]  }
 0x44d   : > { %v1320_v61 = vpack.c.bf16 %v3854_v57, %v3858_v59  ;;  %v3728_v57 = vld [vmem:[#allocation11 + $0x2b4] ss:$8 sps:$4 sm:$0xff]   ;;  %v3731_v59 = vld [vmem:[#allocation11 + $0x2a4] ss:$8 sps:$4 sm:$0xff]  }
 0x44e   : > { %1567 = vmatprep.mubr.bf16.mxu1 %v1321_v60  ;;  %v3729_v60 = vld [vmem:[#allocation11 + $0x2a0] ss:$8 sps:$4 sm:$0xff]  }
 0x44f   : > { %1568 = vmatmul.mubr.bf16.gmra.mxu1 %v1320_v61  ;;  %v3734_v61 = vld [vmem:[#allocation11 + $0x294] ss:$8 sps:$4 sm:$0xff]  }
 0x450   : > { %2083 = vmatprep.mubr.bf16.mxu1 %v4330_v29 }
 0x4ff   : > { %v1549_v62 = vpop.f32.mrf.mxu1 }
 0x501   : > { %v1551_v63 = vpop.f32.mrf.mxu1 }
 0x503   : > { %v1553_v1 = vpop.f32.mrf.mxu1 }
 0x504   : > { %v1585_v30 = vpack.c.bf16 %v1553_v1, %v1549_v62  ;;  %v3732_v62 = vld [vmem:[#allocation11 + $0x290] ss:$8 sps:$4 sm:$0xff]   ;;  %v3735_v1 = vld [vmem:[#allocation11 + $0x280] ss:$8 sps:$4 sm:$0xff]  }
 0x505   : > { %v1555_v2 = vpop.f32.mrf.mxu1 }
 0x506   : > { %v1586_v23 = vpack.c.bf16 %v1555_v2, %v1551_v63  ;;  %v3737_v63 = vld [vmem:[#allocation11 + $0x284] ss:$8 sps:$4 sm:$0xff]  }
 0x507   : > { %v1559_v3 = vpop.f32.mrf.mxu1  ;;  %v1679_v2 = vld [vmem:[#allocation14 + $0x60] sm:$0xff] }
 0x509   : > { %v1561_v4 = vpop.f32.mrf.mxu1 }
 0x50b   : > { %v1563_v5 = vpop.f32.mrf.mxu1 }
 0x50c   : > { %v1587_v22 = vpack.c.bf16 %v1563_v5, %v1559_v3 }
 0x50d   : > { %v1565_v7 = vpop.f32.mrf.mxu1 }
 0x50e   : > { %v1588_v17 = vpack.c.bf16 %v1565_v7, %v1561_v4  ;;  %v1680_v4 = vld [vmem:[#allocation14 + $0x68] sm:$0xff] }
 0x50f   : > { %v1569_v8 = vpop.f32.mrf.mxu1 }
 0x511   : > { %v1571_v10 = vpop.f32.mrf.mxu1 }
 0x513   : > { %v1573_v11 = vpop.f32.mrf.mxu1 }
 0x514   : > { %v1589_v16 = vpack.c.bf16 %v1573_v11, %v1569_v8  ;;  %v1705_v8 = vld [vmem:[#allocation16 + $0x68] sm:$0xff]  ;;  %v1704_v11 = vld [vmem:[#allocation16 + $0x60] sm:$0xff] }
 0x515   : > { %v1575_v13 = vpop.f32.mrf.mxu1 }
 0x516   : > { %v1590_v15 = vpack.c.bf16 %v1575_v13, %v1571_v10  ;;  %v1681_v10 = vld [vmem:[#allocation14 + $0x70] sm:$0xff] }
 0x518   : > { %1625 = vmatprep.subr.bf16.mxu0 %v1590_v15 }
 0x519   : > { %1626 = vmatpush1.bf16.msra.mxu0 %v1589_v16  ;;  %v1706_v16 = vld [vmem:[#allocation16 + $0x70] sm:$0xff] }
 0x51a   : > { %1627 = vmatprep.subr.bf16.mxu0 %v1588_v17  ;;  %v1682_v17 = vld [vmem:[#allocation14 + $0x78] sm:$0xff] }
 0x51d   : > { %1628 = vmatpush1.bf16.msra.mxu0 %v1587_v22 }
 0x51e   : > { %1629 = vmatprep.subr.bf16.mxu0 %v1586_v23 }
 0x521   : > { %1630 = vmatpush1.bf16.msra.mxu0 %v1585_v30 }
 0x522   : > { %1951 = vmatprep.subr.bf16.mxu0 %v3692_v28 }
 0x524   : > { %3213 = vmatmul.mubr.msk.bf16.vlgmr.msra.gmra.mxu0 %vm607_vm1, %v3687_v31  ;;  %v1707_v31 = vld [vmem:[#allocation16 + $0x78] sm:$0xff] }
 0x525   : > { %1657 = vmatprep.mubr.bf16.mxu0 %v4330_v29  ;;  %1952 = vmatpush1.bf16.msra.mxu0 %v3690_v32 }
 0x526   : > { %1953 = vmatprep.subr.bf16.mxu0 %v3695_v33 }
 0x529   : > { %1954 = vmatpush1.bf16.msra.mxu0 %v3693_v34  ;;  %v1683_v34 = vld [vmem:[#allocation14 + $0x80] sm:$0xff] }
 0x52a   : > { %1955 = vmatprep.subr.bf16.mxu0 %v3698_v35 }
 0x52c   : > { %3214 = vmatmul.mubr.msk.bf16.gmra.mxu0 %vm607_vm1, %v3688_v36  ;;  %v1684_v36 = vld [vmem:[#allocation14 + $0x88] sm:$0xff] }
 0x52d   : > { %1667 = vmatprep.mubr.bf16.mxu0 %v4330_v29  ;;  %1956 = vmatpush1.bf16.msra.mxu0 %v3696_v37 }
 0x52e   : > { %1957 = vmatprep.subr.bf16.mxu0 %v3701_v38 }
 0x531   : > { %1958 = vmatpush1.bf16.msra.mxu0 %v3699_v39 }
 0x532   : > { %1959 = vmatprep.subr.bf16.mxu0 %v3704_v40  ;;  %v1709_v40 = vld [vmem:[#allocation16 + $0x88] sm:$0xff] }
 0x534   : > { %3215 = vmatmul.mubr.msk.bf16.gmra.mxu0 %vm607_vm1, %v3689_v41  ;;  %v1685_v41 = vld [vmem:[#allocation14 + $0x90] sm:$0xff] }
 0x535   : > { %1960 = vmatpush1.bf16.msra.mxu0 %v3702_v42  ;;  %v1708_v42 = vld [vmem:[#allocation16 + $0x80] sm:$0xff] }
 0x536   : > { %1961 = vmatprep.subr.bf16.mxu0 %v3707_v43 }
 0x539   : > { %1962 = vmatpush1.bf16.msra.mxu0 %v3705_v44 }
 0x53a   : > { %1963 = vmatprep.subr.bf16.mxu0 %v3710_v45  ;;  %v1710_v45 = vld [vmem:[#allocation16 + $0x90] sm:$0xff] }
 0x53d   : > { %1964 = vmatpush1.bf16.msra.mxu0 %v3708_v46  ;;  %v1686_v46 = vld [vmem:[#allocation14 + $0x98] sm:$0xff] }
 0x53e   : > { %1965 = vmatprep.subr.bf16.mxu0 %v3713_v47 }
 0x541   : > { %1966 = vmatpush1.bf16.msra.mxu0 %v3711_v48 }
 0x542   : > { %1967 = vmatprep.subr.bf16.mxu0 %v3716_v49 }
 0x545   : > { %1968 = vmatpush2.bf16.msra.mxu0 %v3714_v50 }
 0x546   : > { %1969 = vmatprep.subr.bf16.mxu0 %v3719_v51  ;;  %v1711_v51 = vld [vmem:[#allocation16 + $0x98] sm:$0xff] }
 0x549   : > { %1970 = vmatpush2.bf16.msra.mxu0 %v3717_v52 }
 0x54a   : > { %1971 = vmatprep.subr.bf16.mxu0 %v3722_v53 }
 0x54d   : > { %1972 = vmatpush2.bf16.msra.mxu0 %v3720_v54  ;;  %v1687_v54 = vld [vmem:[#allocation14 + $0xa0] sm:$0xff] }
 0x54e   : > { %1973 = vmatprep.subr.bf16.mxu0 %v3725_v55 }
 0x551   : > { %1974 = vmatpush2.bf16.msra.mxu0 %v3723_v56  ;;  %v1688_v56 = vld [vmem:[#allocation14 + $0xa8] sm:$0xff] }
 0x552   : > { %1975 = vmatprep.subr.bf16.mxu0 %v3728_v57 }
 0x555   : > { %1976 = vmatpush2.bf16.msra.mxu0 %v3726_v58 }
 0x556   : > { %1977 = vmatprep.subr.bf16.mxu0 %v3731_v59 }
 0x559   : > { %1978 = vmatpush2.bf16.msra.mxu0 %v3729_v60  ;;  %v1713_v60 = vld [vmem:[#allocation16 + $0xa8] sm:$0xff] }
 0x55a   : > { %1979 = vmatprep.subr.bf16.mxu0 %v3734_v61  ;;  %v1689_v61 = vld [vmem:[#allocation14 + $0xb0] sm:$0xff] }
 0x55d   : > { %1980 = vmatpush2.bf16.msra.mxu0 %v3732_v62  ;;  %v1712_v62 = vld [vmem:[#allocation16 + $0xa0] sm:$0xff] }
 0x55e   : > { %1981 = vmatprep.subr.bf16.mxu0 %v3737_v63 }
 0x561   : > { %1982 = vmatpush2.bf16.msra.mxu0 %v3735_v1 }
 0x5e4   : > { %v1649_v3 = vpop.f32.mrf.mxu0 }
 0x5e5   : > { %v1691_v5 = vmul.f32 %v1679_v2, %v1649_v3  ;;  %v1714_v2 = vld [vmem:[#allocation16 + $0xb0] sm:$0xff]  ;;  %v1690_v3 = vld [vmem:[#allocation14 + $0xb8] sm:$0xff] }
 0x5e6   : > { %v1651_v7 = vpop.f32.mrf.mxu0 }
 0x5e7   : > { %v1692_v13 = vmul.f32 %v1680_v4, %v1651_v7  ;;  %v1716_v28 = vadd.f32 %v1704_v11, %v1691_v5 }
 0x5e8   : > { %v1653_v15 = vpop.f32.mrf.mxu0 }
 0x5e9   : > { %v1717_v22 = vadd.f32 %v1705_v8, %v1692_v13  ;;  %v1693_v23 = vmul.f32 %v1681_v10, %v1653_v15  ;;  %v1715_v13 = vld [vmem:[#allocation16 + $0xb8] sm:$0xff] }
 0x5ea   : > { %v1655_v30 = vpop.f32.mrf.mxu0 }
 0x5eb   : > { %v1718_v32 = vadd.f32 %v1706_v16, %v1693_v23  ;;  %v1694_v33 = vmul.f32 %v1682_v17, %v1655_v30  ;;  %3859 = vtanh.f32 %v1717_v22 }
 0x5ec   : > { %v1659_v35 = vpop.f32.mrf.mxu0 }
 0x5ed   : > { %3861 = vtanh.f32 %v1718_v32  ;;  %v1719_v37 = vadd.f32 %v1707_v31, %v1694_v33  ;;  %v1695_v38 = vmul.f32 %v1683_v34, %v1659_v35 }
 0x5ee   : > { %3863 = vtanh.f32 %v1716_v28  ;;  %v1661_v39 = vpop.f32.mrf.mxu0 }
 0x5ef   : > { %3865 = vtanh.f32 %v1719_v37  ;;  %v1696_v43 = vmul.f32 %v1684_v36, %v1661_v39  ;;  %v1720_v49 = vadd.f32 %v1708_v42, %v1695_v38 }
 0x5f0   : > { %v1663_v44 = vpop.f32.mrf.mxu0 }
 0x5f1   : > { %v1721_v47 = vadd.f32 %v1709_v40, %v1696_v43  ;;  %v1697_v48 = vmul.f32 %v1685_v41, %v1663_v44 }
 0x5f2   : > { %v1665_v50 = vpop.f32.mrf.mxu0 }
 0x5f3   : > { %v1722_v52 = vadd.f32 %v1710_v45, %v1697_v48  ;;  %v1698_v53 = vmul.f32 %v1686_v46, %v1665_v50  ;;  %3867 = vtanh.f32 %v1721_v47 }
 0x5f4   : > { %v1669_v55 = vpop.f32.mrf.mxu0 }
 0x5f5   : > { %3869 = vtanh.f32 %v1722_v52  ;;  %v1723_v57 = vadd.f32 %v1711_v51, %v1698_v53  ;;  %v1699_v58 = vmul.f32 %v1687_v54, %v1669_v55 }
 0x5f6   : > { %3871 = vtanh.f32 %v1720_v49  ;;  %v1671_v59 = vpop.f32.mrf.mxu0 }
 0x5f7   : > { %3873 = vtanh.f32 %v1723_v57  ;;  %v1700_v63 = vmul.f32 %v1688_v56, %v1671_v59  ;;  %v1724_v10 = vadd.f32 %v1712_v62, %v1699_v58  ;;  %v3738_v62 = vld [vmem:[#allocation13 + $0x30] sm:$0xff]  }
 0x5f8   : > { %v1673_v1 = vpop.f32.mrf.mxu0  ;;  %v3860_v4 = vpop.eup %3859 }
 0x5f9   : > { %v1725_v5 = vadd.f32 %v1713_v60, %v1700_v63  ;;  %v1701_v7 = vmul.f32 %v1689_v61, %v1673_v1  ;;  %v4732_v30 = vadd.f32 %v3860_v4, %v4680_v6  ;;  %v3743_v60 = vld [vmem:[#allocation11 + $0x374] ss:$8 sps:$4 sm:$0xff]   ;;  %v3741_v63 = vld [vmem:[#allocation11 + $0x370] ss:$8 sps:$4 sm:$0xff]   ;;  %v3746_v1 = vld [vmem:[#allocation11 + $0x364] ss:$8 sps:$4 sm:$0xff]  }
 0x5fa   : > { %v3862_v8 = vpop.eup %3861  ;;  %v1675_v11 = vpop.f32.mrf.mxu0  ;;  %v3739_v4 = vld [vmem:[#allocation13 + $0x38] sm:$0xff]  }
 0x5fb   : > { %v3864_v15 = vpop.eup %3863  ;;  %v1726_v16 = vadd.f32 %v1714_v2, %v1701_v7  ;;  %v1702_v17 = vmul.f32 %v1690_v3, %v1675_v11  ;;  %3875 = vtanh.f32 %v1725_v5  ;;  %v4729_v23 = vadd.f32 %v3862_v8, %v4682_v9  ;;  %v3744_v2 = vld [vmem:[#allocation11 + $0x360] ss:$8 sps:$4 sm:$0xff]   ;;  %v3749_v3 = vld [vmem:[#allocation11 + $0x354] ss:$8 sps:$4 sm:$0xff]   ;;  %v3747_v5 = vld [vmem:[#allocation11 + $0x350] ss:$8 sps:$4 sm:$0xff]  }
 0x5fc   : > { %v3866_v22 = vpop.eup %3865  ;;  %v4738_v32 = vadd.f32 %v3864_v15, %v4686_v14  ;;  %v3752_v7 = vld [vmem:[#allocation11 + $0x344] ss:$8 sps:$4 sm:$0xff]   ;;  %v3750_v8 = vld [vmem:[#allocation11 + $0x340] ss:$8 sps:$4 sm:$0xff]  }
 0x5fd   : > { %3877 = vtanh.f32 %v1726_v16  ;;  %v1727_v28 = vadd.f32 %v1715_v13, %v1702_v17  ;;  %v4735_v31 = vadd.f32 %v3866_v22, %v4684_v12  ;;  %v3740_v11 = vld [vmem:[#allocation13 + $0x40] sm:$0xff]   ;;  %v3753_v13 = vld [vmem:[#allocation11 + $0x330] ss:$8 sps:$4 sm:$0xff]   ;;  %v3761_v17 = vld [vmem:[#allocation11 + $0x314] ss:$8 sps:$4 sm:$0xff]  }
 0x5fe   : > { %3879 = vtanh.f32 %v1724_v10  ;;  %v1752_v9 = vpack.c.bf16 %v4729_v23, %v4738_v32  ;;  %v3755_v10 = vld [vmem:[#allocation11 + $0x334] ss:$8 sps:$4 sm:$0xff]   ;;  %v3758_v15 = vld [vmem:[#allocation11 + $0x324] ss:$8 sps:$4 sm:$0xff]   ;;  %v3756_v16 = vld [vmem:[#allocation11 + $0x320] ss:$8 sps:$4 sm:$0xff]  }
 0x5ff   : > { %3881 = vtanh.f32 %v1727_v28  ;;  %v1753_v33 = vpack.c.bf16 %v4735_v31, %v4732_v30  ;;  %v3759_v22 = vld [vmem:[#allocation11 + $0x310] ss:$8 sps:$4 sm:$0xff]   ;;  %v3764_v28 = vld [vmem:[#allocation11 + $0x304] ss:$8 sps:$4 sm:$0xff]  }
 0x600   : > { %v3868_v34 = vpop.eup %3867 }
 0x601   : > { %1983 = vmatprep.mubr.bf16.mxu0 %v1753_v33  ;;  %v4748_v37 = vadd.f32 %v3868_v34, %v4692_v18  ;;  %v3762_v33 = vld [vmem:[#allocation11 + $0x300] ss:$8 sps:$4 sm:$0xff]   ;;  %v3765_v34 = vld [vmem:[#allocation11 + $0x3f0] ss:$8 sps:$4 sm:$0xff]  }
 0x602   : > { %v3870_v35 = vpop.eup %3869  ;;  %1984 = vmatmul.mubr.bf16.vlgmr.msra.gmra.mxu0 %v1752_v9  ;;  %v3767_v9 = vld [vmem:[#allocation11 + $0x3f4] ss:$8 sps:$4 sm:$0xff]  }
 0x603   : > { %v3872_v6 = vpop.eup %3871  ;;  %v4745_v12 = vadd.f32 %v3870_v35, %v4694_v19  ;;  %v3770_v35 = vld [vmem:[#allocation11 + $0x3e4] ss:$8 sps:$4 sm:$0xff]  }
 0x604   : > { %v3874_v36 = vpop.eup %3873  ;;  %v4754_v38 = vadd.f32 %v3872_v6, %v4698_v21  ;;  %v3768_v6 = vld [vmem:[#allocation11 + $0x3e0] ss:$8 sps:$4 sm:$0xff]  }
 0x605   : > { %v4751_v14 = vadd.f32 %v3874_v36, %v4696_v20  ;;  %v3773_v36 = vld [vmem:[#allocation11 + $0x3d4] ss:$8 sps:$4 sm:$0xff]  }
 0x606   : > { %v1754_v40 = vpack.c.bf16 %v4745_v12, %v4754_v38 }
 0x607   : > { %v1755_v39 = vpack.c.bf16 %v4751_v14, %v4748_v37 }
 0x608   : > { %v3876_v41 = vpop.eup %3875 }
 0x609   : > { %1993 = vmatprep.mubr.bf16.mxu0 %v1755_v39  ;;  %v4764_v20 = vadd.f32 %v3876_v41, %v4704_v24  ;;  %v3771_v39 = vld [vmem:[#allocation11 + $0x3d0] ss:$8 sps:$4 sm:$0xff]   ;;  %v3774_v41 = vld [vmem:[#allocation11 + $0x3c0] ss:$8 sps:$4 sm:$0xff]  }
 0x60a   : > { %v3878_v42 = vpop.eup %3877  ;;  %1994 = vmatmul.mubr.bf16.gmra.mxu0 %v1754_v40  ;;  %v3776_v40 = vld [vmem:[#allocation11 + $0x3c4] ss:$8 sps:$4 sm:$0xff]  }
 0x60b   : > { %v3880_v19 = vpop.eup %3879  ;;  %v4761_v18 = vadd.f32 %v3878_v42, %v4706_v25  ;;  %v3779_v42 = vld [vmem:[#allocation11 + $0x3b4] ss:$8 sps:$4 sm:$0xff]  }
 0x60c   : > { %v3882_v43 = vpop.eup %3881  ;;  %v4770_v44 = vadd.f32 %v3880_v19, %v4710_v27  ;;  %v3777_v19 = vld [vmem:[#allocation11 + $0x3b0] ss:$8 sps:$4 sm:$0xff]  }
 0x60d   : > { %v4767_v21 = vadd.f32 %v3882_v43, %v4708_v26  ;;  %v3782_v43 = vld [vmem:[#allocation11 + $0x3a4] ss:$8 sps:$4 sm:$0xff]  }
 0x60e   : > { %v1756_v46 = vpack.c.bf16 %v4761_v18, %v4770_v44 }
 0x60f   : > { %v1757_v45 = vpack.c.bf16 %v4767_v21, %v4764_v20 }
 0x611   : > { %2003 = vmatprep.mubr.bf16.mxu0 %v1757_v45  ;;  %v3780_v45 = vld [vmem:[#allocation11 + $0x3a0] ss:$8 sps:$4 sm:$0xff]  }
 0x612   : > { %2004 = vmatmul.mubr.bf16.gmra.mxu0 %v1756_v46  ;;  %v3785_v46 = vld [vmem:[#allocation11 + $0x394] ss:$8 sps:$4 sm:$0xff]  }
 0x613   : > { %2507 = vmatprep.mubr.bf16.mxu0 %v4330_v29 }
 0x6c2   : > { %v1985_v25 = vpop.f32.mrf.mxu0 }
 0x6c4   : > { %v1987_v47 = vpop.f32.mrf.mxu0 }
 0x6c6   : > { %v1989_v24 = vpop.f32.mrf.mxu0 }
 0x6c7   : > { %v2021_v61 = vpack.c.bf16 %v1989_v24, %v1985_v25  ;;  %v3783_v25 = vld [vmem:[#allocation11 + $0x390] ss:$8 sps:$4 sm:$0xff]   ;;  %v3786_v24 = vld [vmem:[#allocation11 + $0x380] ss:$8 sps:$4 sm:$0xff]  }
 0x6c8   : > { %v1991_v48 = vpop.f32.mrf.mxu0 }
 0x6c9   : > { %v2022_v59 = vpack.c.bf16 %v1991_v48, %v1987_v47  ;;  %v3788_v47 = vld [vmem:[#allocation11 + $0x384] ss:$8 sps:$4 sm:$0xff]  }
 0x6ca   : > { %v1995_v49 = vpop.f32.mrf.mxu0 }
 0x6cc   : > { %v1997_v26 = vpop.f32.mrf.mxu0 }
 0x6ce   : > { %v1999_v50 = vpop.f32.mrf.mxu0 }
 0x6cf   : > { %v2023_v58 = vpack.c.bf16 %v1999_v50, %v1995_v49  ;;  %v2116_v49 = vld [vmem:[#allocation14 + $0xc8] sm:$0xff] }
 0x6d0   : > { %v2001_v51 = vpop.f32.mrf.mxu0 }
 0x6d1   : > { %v2024_v57 = vpack.c.bf16 %v2001_v51, %v1997_v26  ;;  %v2115_v26 = vld [vmem:[#allocation14 + $0xc0] sm:$0xff]  ;;  %v2141_v51 = vld [vmem:[#allocation16 + $0xc8] sm:$0xff] }
 0x6d2   : > { %v2005_v27 = vpop.f32.mrf.mxu0 }
 0x6d4   : > { %v2007_v52 = vpop.f32.mrf.mxu0 }
 0x6d6   : > { %v2009_v53 = vpop.f32.mrf.mxu0 }
 0x6d7   : > { %v2025_v56 = vpack.c.bf16 %v2009_v53, %v2005_v27  ;;  %v2117_v27 = vld [vmem:[#allocation14 + $0xd0] sm:$0xff] }
 0x6d8   : > { %v2011_v54 = vpop.f32.mrf.mxu0 }
 0x6d9   : > { %v2026_v55 = vpack.c.bf16 %v2011_v54, %v2007_v52 }
 0x6db   : > { %2061 = vmatprep.subr.bf16.mxu1 %v2026_v55  ;;  %v2142_v55 = vld [vmem:[#allocation16 + $0xd0] sm:$0xff] }
 0x6dc   : > { %2062 = vmatpush1.bf16.msra.mxu1 %v2025_v56  ;;  %v2118_v56 = vld [vmem:[#allocation14 + $0xd8] sm:$0xff] }
 0x6dd   : > { %2063 = vmatprep.subr.bf16.mxu1 %v2024_v57  ;;  %v2140_v57 = vld [vmem:[#allocation16 + $0xc0] sm:$0xff] }
 0x6e0   : > { %2064 = vmatpush1.bf16.msra.mxu1 %v2023_v58 }
 0x6e1   : > { %2065 = vmatprep.subr.bf16.mxu1 %v2022_v59 }
 0x6e4   : > { %2066 = vmatpush1.bf16.msra.mxu1 %v2021_v61  ;;  %v2143_v61 = vld [vmem:[#allocation16 + $0xd8] sm:$0xff] }
 0x6e5   : > { %2375 = vmatprep.subr.bf16.mxu1 %v3743_v60 }
 0x6e7   : > { %3251 = vmatmul.mubr.msk.bf16.vlgmr.msra.gmra.mxu1 %vm607_vm1, %v3738_v62 }
 0x6e8   : > { %2093 = vmatprep.mubr.bf16.mxu1 %v4330_v29  ;;  %2376 = vmatpush1.bf16.msra.mxu1 %v3741_v63 }
 0x6e9   : > { %2377 = vmatprep.subr.bf16.mxu1 %v3746_v1 }
 0x6ec   : > { %2378 = vmatpush1.bf16.msra.mxu1 %v3744_v2 }
 0x6ed   : > { %2379 = vmatprep.subr.bf16.mxu1 %v3749_v3  ;;  %v2120_v3 = vld [vmem:[#allocation14 + $0xe8] sm:$0xff] }
 0x6ef   : > { %3252 = vmatmul.mubr.msk.bf16.gmra.mxu1 %vm607_vm1, %v3739_v4 }
 0x6f0   : > { %2103 = vmatprep.mubr.bf16.mxu1 %v4330_v29  ;;  %2380 = vmatpush1.bf16.msra.mxu1 %v3747_v5  ;;  %v2119_v5 = vld [vmem:[#allocation14 + $0xe0] sm:$0xff] }
 0x6f1   : > { %2381 = vmatprep.subr.bf16.mxu1 %v3752_v7 }
 0x6f4   : > { %2382 = vmatpush1.bf16.msra.mxu1 %v3750_v8  ;;  %v2145_v8 = vld [vmem:[#allocation16 + $0xe8] sm:$0xff] }
 0x6f5   : > { %2383 = vmatprep.subr.bf16.mxu1 %v3755_v10  ;;  %v2121_v10 = vld [vmem:[#allocation14 + $0xf0] sm:$0xff] }
 0x6f7   : > { %3253 = vmatmul.mubr.msk.bf16.gmra.mxu1 %vm607_vm1, %v3740_v11 }
 0x6f8   : > { %2384 = vmatpush1.bf16.msra.mxu1 %v3753_v13 }
 0x6f9   : > { %2385 = vmatprep.subr.bf16.mxu1 %v3758_v15 }
 0x6fc   : > { %2386 = vmatpush1.bf16.msra.mxu1 %v3756_v16  ;;  %v2146_v16 = vld [vmem:[#allocation16 + $0xf0] sm:$0xff] }
 0x6fd   : > { %2387 = vmatprep.subr.bf16.mxu1 %v3761_v17  ;;  %v2122_v17 = vld [vmem:[#allocation14 + $0xf8] sm:$0xff] }
 0x700   : > { %2388 = vmatpush1.bf16.msra.mxu1 %v3759_v22  ;;  %v2144_v22 = vld [vmem:[#allocation16 + $0xe0] sm:$0xff] }
 0x701   : > { %2389 = vmatprep.subr.bf16.mxu1 %v3764_v28 }
 0x704   : > { %2390 = vmatpush1.bf16.msra.mxu1 %v3762_v33 }
 0x705   : > { %2391 = vmatprep.subr.bf16.mxu1 %v3767_v9 }
 0x708   : > { %2392 = vmatpush2.bf16.msra.mxu1 %v3765_v34  ;;  %v2147_v34 = vld [vmem:[#allocation16 + $0xf8] sm:$0xff] }
 0x709   : > { %2393 = vmatprep.subr.bf16.mxu1 %v3770_v35 }
 0x70c   : > { %2394 = vmatpush2.bf16.msra.mxu1 %v3768_v6 }
 0x70d   : > { %2395 = vmatprep.subr.bf16.mxu1 %v3773_v36 }
 0x710   : > { %2396 = vmatpush2.bf16.msra.mxu1 %v3771_v39 }
 0x711   : > { %2397 = vmatprep.subr.bf16.mxu1 %v3776_v40  ;;  %v2124_v40 = vld [vmem:[#allocation14 + $0x108] sm:$0xff] }
 0x714   : > { %2398 = vmatpush2.bf16.msra.mxu1 %v3774_v41 }
 0x715   : > { %2399 = vmatprep.subr.bf16.mxu1 %v3779_v42  ;;  %v2123_v42 = vld [vmem:[#allocation14 + $0x100] sm:$0xff] }
 0x718   : > { %2400 = vmatpush2.bf16.msra.mxu1 %v3777_v19 }
 0x719   : > { %2401 = vmatprep.subr.bf16.mxu1 %v3782_v43  ;;  %v2149_v43 = vld [vmem:[#allocation16 + $0x108] sm:$0xff] }
 0x71c   : > { %2402 = vmatpush2.bf16.msra.mxu1 %v3780_v45  ;;  %v2125_v45 = vld [vmem:[#allocation14 + $0x110] sm:$0xff] }
 0x71d   : > { %2403 = vmatprep.subr.bf16.mxu1 %v3785_v46 }
 0x720   : > { %2404 = vmatpush2.bf16.msra.mxu1 %v3783_v25 }
 0x721   : > { %2405 = vmatprep.subr.bf16.mxu1 %v3788_v47 }
 0x724   : > { %2406 = vmatpush2.bf16.msra.mxu1 %v3786_v24  ;;  %v2150_v24 = vld [vmem:[#allocation16 + $0x110] sm:$0xff] }
 0x725   : > { %3382 = vmatprep.subr.bf16.mxu1 %v4328_v0 }
 0x7a7   : > { %v2085_v48 = vpop.f32.mrf.mxu1 }
 0x7a8   : > { %v2127_v53 = vmul.f32 %v2115_v26, %v2085_v48  ;;  %v2126_v48 = vld [vmem:[#allocation14 + $0x118] sm:$0xff] }
 0x7a9   : > { %v2087_v50 = vpop.f32.mrf.mxu1 }
 0x7aa   : > { %v2128_v52 = vmul.f32 %v2116_v49, %v2087_v50  ;;  %v2152_v1 = vadd.f32 %v2140_v57, %v2127_v53  ;;  %v2148_v49 = vld [vmem:[#allocation16 + $0x100] sm:$0xff] }
 0x7ab   : > { %v2089_v54 = vpop.f32.mrf.mxu1 }
 0x7ac   : > { %v2153_v58 = vadd.f32 %v2141_v51, %v2128_v52  ;;  %v2129_v59 = vmul.f32 %v2117_v27, %v2089_v54  ;;  %v2151_v52 = vld [vmem:[#allocation16 + $0x118] sm:$0xff] }
 0x7ad   : > { %v2091_v60 = vpop.f32.mrf.mxu1 }
 0x7ae   : > { %v2154_v62 = vadd.f32 %v2142_v55, %v2129_v59  ;;  %v2130_v63 = vmul.f32 %v2118_v56, %v2091_v60  ;;  %3883 = vtanh.f32 %v2153_v58 }
 0x7af   : > { %v2095_v2 = vpop.f32.mrf.mxu1 }
 0x7b0   : > { %v2155_v4 = vadd.f32 %v2143_v61, %v2130_v63  ;;  %3885 = vtanh.f32 %v2154_v62  ;;  %v2131_v13 = vmul.f32 %v2119_v5, %v2095_v2 }
 0x7b1   : > { %v2097_v7 = vpop.f32.mrf.mxu1 }
 0x7b2   : > { %3887 = vtanh.f32 %v2155_v4  ;;  %v2132_v11 = vmul.f32 %v2120_v3, %v2097_v7  ;;  %v2156_v36 = vadd.f32 %v2144_v22, %v2131_v13 }
 0x7b3   : > { %3889 = vtanh.f32 %v2152_v1  ;;  %v2099_v15 = vpop.f32.mrf.mxu1 }
 0x7b4   : > { %v2157_v28 = vadd.f32 %v2145_v8, %v2132_v11  ;;  %v2133_v33 = vmul.f32 %v2121_v10, %v2099_v15 }
 0x7b5   : > { %v2101_v9 = vpop.f32.mrf.mxu1 }
 0x7b6   : > { %v2158_v35 = vadd.f32 %v2146_v16, %v2133_v33  ;;  %v2134_v6 = vmul.f32 %v2122_v17, %v2101_v9  ;;  %3891 = vtanh.f32 %v2157_v28 }
 0x7b7   : > { %v2105_v39 = vpop.f32.mrf.mxu1 }
 0x7b8   : > { %v2159_v41 = vadd.f32 %v2147_v34, %v2134_v6  ;;  %3893 = vtanh.f32 %v2158_v35  ;;  %v2135_v25 = vmul.f32 %v2123_v42, %v2105_v39 }
 0x7b9   : > { %v2107_v19 = vpop.f32.mrf.mxu1 }
 0x7ba   : > { %3895 = vtanh.f32 %v2159_v41  ;;  %v2136_v46 = vmul.f32 %v2124_v40, %v2107_v19  ;;  %v2160_v57 = vadd.f32 %v2148_v49, %v2135_v25  ;;  %v3789_v25 = vld [vmem:[#allocation13 + $0x48] sm:$0xff]   ;;  %v3794_v49 = vld [vmem:[#allocation17 + $0x70] sm:$0xff]  }
 0x7bb   : > { %3897 = vtanh.f32 %v2156_v36  ;;  %v2109_v47 = vpop.f32.mrf.mxu1  ;;  %v3884_v51 = vpop.eup %3883 }
 0x7bc   : > { %v2161_v26 = vadd.f32 %v2149_v43, %v2136_v46  ;;  %v2137_v50 = vmul.f32 %v2125_v45, %v2109_v47  ;;  %v3792_v45 = vld [vmem:[#allocation17 + $0x78] sm:$0xff]  }
 0x7bd   : > { %v2111_v27 = vpop.f32.mrf.mxu1  ;;  %v3886_v53 = vpop.eup %3885  ;;  %v3793_v47 = vld [vmem:[#allocation17 + $0x38] sm:$0xff]  }
 0x7be   : > { %v2162_v54 = vadd.f32 %v2150_v24, %v2137_v50  ;;  %v2138_v55 = vmul.f32 %v2126_v48, %v2111_v27  ;;  %3899 = vtanh.f32 %v2161_v26  ;;  %v3790_v24 = vld [vmem:[#allocation13 + $0x50] sm:$0xff]   ;;  %v3791_v48 = vld [vmem:[#allocation13 + $0x58] sm:$0xff]   ;;  %v3796_v50 = vld [vmem:[#allocation17 + $0x68] sm:$0xff]  }
 0x7bf   : > { %v3888_v56 = vpop.eup %3887  ;;  %v3795_v26 = vld [vmem:[#allocation17 + $0x30] sm:$0xff]   ;;  %v3798_v27 = vld [vmem:[#allocation17 + $0x60] sm:$0xff]  }
 0x7c0   : > { %v3890_v58 = vpop.eup %3889  ;;  %v2163_v59 = vadd.f32 %v2151_v52, %v2138_v55  ;;  %v2177_v60 = vpack.c.bf16 %v3888_v56, %v3884_v51  ;;  %3901 = vtanh.f32 %v2162_v54  ;;  %v3797_v51 = vld [vmem:[#allocation17 + $0x28] sm:$0xff]   ;;  %v3799_v52 = vld [vmem:[#allocation17 + $0x20] sm:$0xff]   ;;  %v3801_v54 = vld [vmem:[#allocation17 + $0x18] sm:$0xff]  }
 0x7c1   : > { %v2176_v61 = vpack.c.bf16 %v3886_v53, %v3890_v58  ;;  %v3800_v53 = vld [vmem:[#allocation17 + $0x58] sm:$0xff]   ;;  %v3803_v55 = vld [vmem:[#allocation17 + $0x10] sm:$0xff]   ;;  %v3804_v56 = vld [vmem:[#allocation17 + $0x48] sm:$0xff]  }
 0x7c2   : > { %3903 = vtanh.f32 %v2163_v59  ;;  %2407 = vmatprep.mubr.bf16.mxu1 %v2177_v60  ;;  %v3806_v58 = vld [vmem:[#allocation17 + $0x40] sm:$0xff]  }
 0x7c3   : > { %3905 = vtanh.f32 %v2160_v57  ;;  %2408 = vmatmul.mubr.bf16.vlgmr.msra.gmra.mxu1 %v2176_v61  ;;  %v3892_v62 = vpop.eup %3891  ;;  %v3805_v57 = vld [vmem:[#allocation17 + $0x8] sm:$0xff]   ;;  %v3807_v59 = vld [vmem:[#allocation17] sm:$0xff]  }
 0x7c4   : > { %v2539_v60 = vld [vmem:[#allocation14 + $0x120] sm:$0xff] }
 0x7c5   : > { %v3894_v63 = vpop.eup %3893 }
 0x7c7   : > { %v3896_v1 = vpop.eup %3895 }
 0x7c8   : > { %v3898_v2 = vpop.eup %3897  ;;  %v2179_v3 = vpack.c.bf16 %v3896_v1, %v3892_v62  ;;  %v2540_v62 = vld [vmem:[#allocation14 + $0x128] sm:$0xff] }
 0x7c9   : > { %v2178_v4 = vpack.c.bf16 %v3894_v63, %v3898_v2  ;;  %v2565_v2 = vld [vmem:[#allocation16 + $0x128] sm:$0xff] }
 0x7ca   : > { %2417 = vmatprep.mubr.bf16.mxu1 %v2179_v3  ;;  %v2541_v3 = vld [vmem:[#allocation14 + $0x130] sm:$0xff] }
 0x7cb   : > { %2418 = vmatmul.mubr.bf16.gmra.mxu1 %v2178_v4  ;;  %v3900_v5 = vpop.eup %3899  ;;  %v2564_v4 = vld [vmem:[#allocation16 + $0x120] sm:$0xff] }
 0x7cd   : > { %v3902_v7 = vpop.eup %3901 }
 0x7cf   : > { %v3904_v8 = vpop.eup %3903 }
 0x7d0   : > { %v3906_v10 = vpop.eup %3905  ;;  %v2181_v11 = vpack.c.bf16 %v3904_v8, %v3900_v5  ;;  %v2566_v8 = vld [vmem:[#allocation16 + $0x130] sm:$0xff] }
 0x7d1   : > { %v2180_v13 = vpack.c.bf16 %v3902_v7, %v3906_v10  ;;  %v2542_v10 = vld [vmem:[#allocation14 + $0x138] sm:$0xff] }
 0x7d2   : > { %2427 = vmatprep.mubr.bf16.mxu1 %v2181_v11 }
 0x7d3   : > { %2428 = vmatmul.mubr.bf16.gmra.mxu1 %v2180_v13 }
 0x7d4   : > { %3388 = vmatprep.mubr.msk.bf16.mxu1 %vm4329_vm0, %v4328_v0 }
 0x883   : > { %v2409_v15 = vpop.f32.mrf.mxu1 }
 0x885   : > { %v2411_v16 = vpop.f32.mrf.mxu1 }
 0x887   : > { %v2413_v17 = vpop.f32.mrf.mxu1 }
 0x888   : > { %v2445_v46 = vpack.c.bf16 %v2413_v17, %v2409_v15  ;;  %v2567_v17 = vld [vmem:[#allocation16 + $0x138] sm:$0xff] }
 0x889   : > { %v2415_v22 = vpop.f32.mrf.mxu1 }
 0x88a   : > { %v2446_v43 = vpack.c.bf16 %v2415_v22, %v2411_v16 }
 0x88b   : > { %v2419_v28 = vpop.f32.mrf.mxu1 }
 0x88d   : > { %v2421_v33 = vpop.f32.mrf.mxu1 }
 0x88f   : > { %v2423_v9 = vpop.f32.mrf.mxu1 }
 0x890   : > { %v2447_v19 = vpack.c.bf16 %v2423_v9, %v2419_v28 }
 0x891   : > { %v2425_v34 = vpop.f32.mrf.mxu1 }
 0x892   : > { %v2448_v42 = vpack.c.bf16 %v2425_v34, %v2421_v33  ;;  %v2543_v33 = vld [vmem:[#allocation14 + $0x140] sm:$0xff]  ;;  %v2544_v34 = vld [vmem:[#allocation14 + $0x148] sm:$0xff] }
 0x893   : > { %v2429_v35 = vpop.f32.mrf.mxu1 }
 0x895   : > { %v2431_v6 = vpop.f32.mrf.mxu1 }
 0x897   : > { %v2433_v36 = vpop.f32.mrf.mxu1 }
 0x898   : > { %v2449_v41 = vpack.c.bf16 %v2433_v36, %v2429_v35 }
 0x899   : > { %v2435_v39 = vpop.f32.mrf.mxu1 }
 0x89a   : > { %v2450_v40 = vpack.c.bf16 %v2435_v39, %v2431_v6  ;;  %v2569_v39 = vld [vmem:[#allocation16 + $0x148] sm:$0xff] }
 0x89c   : > { %2485 = vmatprep.subr.bf16.mxu0 %v2450_v40  ;;  %v2545_v40 = vld [vmem:[#allocation14 + $0x150] sm:$0xff] }
 0x89d   : > { %2486 = vmatpush1.bf16.msra.mxu0 %v2449_v41  ;;  %v2568_v41 = vld [vmem:[#allocation16 + $0x140] sm:$0xff] }
 0x89e   : > { %2487 = vmatprep.subr.bf16.mxu0 %v2448_v42 }
 0x8a1   : > { %2488 = vmatpush1.bf16.msra.mxu0 %v2447_v19 }
 0x8a2   : > { %2489 = vmatprep.subr.bf16.mxu0 %v2446_v43  ;;  %v2570_v43 = vld [vmem:[#allocation16 + $0x150] sm:$0xff] }
 0x8a5   : > { %2490 = vmatpush1.bf16.msra.mxu0 %v2445_v46 }
 0x8a6   : > { %3324 = vmatprep.subr.bf16.mxu0 %v3792_v45  ;;  %v2546_v45 = vld [vmem:[#allocation14 + $0x158] sm:$0xff] }
 0x8a8   : > { %3289 = vmatmul.mubr.msk.bf16.vlgmr.msra.gmra.mxu0 %vm607_vm1, %v3789_v25 }
 0x8a9   : > { %2517 = vmatprep.mubr.bf16.mxu0 %v4330_v29  ;;  %3325 = vmatpush3.bf16.msra.mxu0 %v3793_v47 }
 0x8aa   : > { %3326 = vmatprep.subr.bf16.mxu0 %v3794_v49 }
 0x8ad   : > { %3327 = vmatpush3.bf16.msra.mxu0 %v3795_v26 }
 0x8ae   : > { %3328 = vmatprep.subr.bf16.mxu0 %v3796_v50  ;;  %v2547_v50 = vld [vmem:[#allocation14 + $0x160] sm:$0xff] }
 0x8b0   : > { %3290 = vmatmul.mubr.msk.bf16.gmra.mxu0 %vm607_vm1, %v3790_v24 }
 0x8b1   : > { %2527 = vmatprep.mubr.bf16.mxu0 %v4330_v29  ;;  %3329 = vmatpush3.bf16.msra.mxu0 %v3797_v51  ;;  %v3802_v29 = vld [vmem:[#allocation17 + $0x50] sm:$0xff]  }
 0x8b2   : > { %3330 = vmatprep.subr.bf16.mxu0 %v3798_v27  ;;  %v2548_v27 = vld [vmem:[#allocation14 + $0x168] sm:$0xff] }
 0x8b5   : > { %3331 = vmatpush3.bf16.msra.mxu0 %v3799_v52 }
 0x8b6   : > { %3332 = vmatprep.subr.bf16.mxu0 %v3800_v53 }
 0x8b8   : > { %3291 = vmatmul.mubr.msk.bf16.gmra.mxu0 %vm607_vm1, %v3791_v48  ;;  %v2571_v48 = vld [vmem:[#allocation16 + $0x158] sm:$0xff] }
 0x8b9   : > { %3333 = vmatpush3.bf16.msra.mxu0 %v3801_v54 }
 0x8ba   : > { %3334 = vmatprep.subr.bf16.mxu0 %v3802_v29  ;;  %v2573_v29 = vld [vmem:[#allocation16 + $0x168] sm:$0xff] }
 0x8bd   : > { %3335 = vmatpush3.bf16.msra.mxu0 %v3803_v55  ;;  %v2549_v55 = vld [vmem:[#allocation14 + $0x170] sm:$0xff] }
 0x8be   : > { %3336 = vmatprep.subr.bf16.mxu0 %v3804_v56  ;;  %v2572_v56 = vld [vmem:[#allocation16 + $0x160] sm:$0xff] }
 0x8c1   : > { %3337 = vmatpush3.bf16.msra.mxu0 %v3805_v57 }
 0x8c2   : > { %3338 = vmatprep.subr.bf16.mxu0 %v3806_v58 }
 0x8c5   : > { %3339 = vmatpush3.bf16.msra.mxu0 %v3807_v59  ;;  %v2574_v59 = vld [vmem:[#allocation16 + $0x170] sm:$0xff] }
 0x968   : > { %v2509_v61 = vpop.f32.mrf.mxu0 }
 0x969   : > { %v2551_v63 = vmul.f32 %v2539_v60, %v2509_v61  ;;  %v2550_v60 = vld [vmem:[#allocation14 + $0x178] sm:$0xff] }
 0x96a   : > { %v2511_v1 = vpop.f32.mrf.mxu0 }
 0x96b   : > { %v2552_v5 = vmul.f32 %v2540_v62, %v2511_v1  ;;  %v2576_v15 = vadd.f32 %v2564_v4, %v2551_v63  ;;  %v2575_v4 = vld [vmem:[#allocation16 + $0x178] sm:$0xff] }
 0x96c   : > { %v2513_v7 = vpop.f32.mrf.mxu0 }
 0x96d   : > { %v2577_v11 = vadd.f32 %v2565_v2, %v2552_v5  ;;  %v2553_v13 = vmul.f32 %v2541_v3, %v2513_v7 }
 0x96e   : > { %v2515_v16 = vpop.f32.mrf.mxu0 }
 0x96f   : > { %v2578_v22 = vadd.f32 %v2566_v8, %v2553_v13  ;;  %v2554_v28 = vmul.f32 %v2542_v10, %v2515_v16  ;;  %3907 = vtanh.f32 %v2577_v11 }
 0x970   : > { %v2519_v9 = vpop.f32.mrf.mxu0 }
 0x971   : > { %3909 = vtanh.f32 %v2578_v22  ;;  %v2579_v35 = vadd.f32 %v2567_v17, %v2554_v28  ;;  %v2555_v6 = vmul.f32 %v2543_v33, %v2519_v9 }
 0x972   : > { %3911 = vtanh.f32 %v2576_v15  ;;  %v2521_v36 = vpop.f32.mrf.mxu0 }
 0x973   : > { %3913 = vtanh.f32 %v2579_v35  ;;  %v2556_v42 = vmul.f32 %v2544_v34, %v2521_v36  ;;  %v2580_v47 = vadd.f32 %v2568_v41, %v2555_v6 }
 0x974   : > { %v2523_v19 = vpop.f32.mrf.mxu0 }
 0x975   : > { %v2581_v46 = vadd.f32 %v2569_v39, %v2556_v42  ;;  %v2557_v25 = vmul.f32 %v2545_v40, %v2523_v19 }
 0x976   : > { %v2525_v24 = vpop.f32.mrf.mxu0 }
 0x977   : > { %v2582_v49 = vadd.f32 %v2570_v43, %v2557_v25  ;;  %v2558_v26 = vmul.f32 %v2546_v45, %v2525_v24  ;;  %3915 = vtanh.f32 %v2581_v46 }
 0x978   : > { %v2529_v51 = vpop.f32.mrf.mxu0 }
 0x979   : > { %3917 = vtanh.f32 %v2582_v49  ;;  %v2583_v52 = vadd.f32 %v2571_v48, %v2558_v26  ;;  %v2559_v53 = vmul.f32 %v2547_v50, %v2529_v51 }
 0x97a   : > { %3919 = vtanh.f32 %v2580_v47  ;;  %v2531_v54 = vpop.f32.mrf.mxu0 }
 0x97b   : > { %3921 = vtanh.f32 %v2583_v52  ;;  %v2560_v57 = vmul.f32 %v2548_v27, %v2531_v54  ;;  %v2584_v2 = vadd.f32 %v2572_v56, %v2559_v53 }
 0x97c   : > { %v2533_v58 = vpop.f32.mrf.mxu0  ;;  %v3908_v61 = vpop.eup %3907 }
 0x97d   : > { %v2585_v62 = vadd.f32 %v2573_v29, %v2560_v57  ;;  %v2561_v63 = vmul.f32 %v2549_v55, %v2533_v58  ;;  %v2601_v15 = vadd.f32 %v3908_v61, %v4732_v30  ;;  %v3808_v57 = vld [vmem:[#allocation19] sm:$0xff]   ;;  %v3809_v58 = vld [vmem:[#allocation19 + $0x8] sm:$0xff]  }
 0x97e   : > { %v3910_v1 = vpop.eup %3909  ;;  %v2535_v3 = vpop.f32.mrf.mxu0 }
 0x97f   : > { %v3912_v5 = vpop.eup %3911  ;;  %v2586_v7 = vadd.f32 %v2574_v59, %v2561_v63  ;;  %v2562_v8 = vmul.f32 %v2550_v60, %v2535_v3  ;;  %3923 = vtanh.f32 %v2585_v62  ;;  %v2602_v11 = vadd.f32 %v3910_v1, %v4729_v23  ;;  %v3810_v59 = vld [vmem:[#allocation19 + $0x10] sm:$0xff]   ;;  %v3308_v60 = vld [vmem:[%s4891_s11] ss:$0 sm:$0xff] }
 0x980   : > { %v3914_v10 = vpop.eup %3913  ;;  %v2600_v17 = vadd.f32 %v3912_v5, %v4738_v32  ;;  %v3931_v1 = vld [vmem:[%s4632_s29] sm:$0xff]  ;;  %v3932_v5 = vld [vmem:[%s4632_s29 + $0x8] sm:$0xff] }
 0x981   : > { %3925 = vtanh.f32 %v2586_v7  ;;  %v2587_v13 = vadd.f32 %v2575_v4, %v2562_v8  ;;  %v2603_v16 = vadd.f32 %v3914_v10, %v4735_v31 }
 0x982   : > { %3927 = vtanh.f32 %v2584_v2  ;;  %v2612_v28 = vpack.c.bf16 %v2602_v11, %v2600_v17 }
 0x983   : > { %3929 = vtanh.f32 %v2587_v13  ;;  %v2613_v22 = vpack.c.bf16 %v2603_v16, %v2601_v15  ;;  %v3933_v13 = vld [vmem:[%s4632_s29 + $0x10] sm:$0xff] }
 0x984   : > { %v3916_v33 = vpop.eup %3915 }
 0x985   : > { %2778 = vmatprep.mubr.bf16.mxu0 %v2613_v22  ;;  %v2605_v6 = vadd.f32 %v3916_v33, %v4748_v37 }
 0x986   : > { %v3918_v9 = vpop.eup %3917  ;;  %2779 = vmatmul.mubr.bf16.vlgmr.msra.gmra.mxu0 %v2612_v28  ;;  %v3934_v28 = vld [vmem:[%s4632_s29 + $0x18] sm:$0xff] }
 0x987   : > { %v3920_v34 = vpop.eup %3919  ;;  %v2606_v23 = vadd.f32 %v3918_v9, %v4745_v12 }
 0x988   : > { %v3922_v35 = vpop.eup %3921  ;;  %v2604_v31 = vadd.f32 %v3920_v34, %v4754_v38 }
 0x989   : > { %v2607_v30 = vadd.f32 %v3922_v35, %v4751_v14 }
 0x98a   : > { %v2614_v39 = vpack.c.bf16 %v2606_v23, %v2604_v31  ;;  %v3935_v23 = vld [vmem:[%s4632_s29 + $0x20] sm:$0xff] }
 0x98b   : > { %v2615_v36 = vpack.c.bf16 %v2607_v30, %v2605_v6 }
 0x98c   : > { %v3924_v32 = vpop.eup %3923 }
 0x98d   : > { %2786 = vmatprep.mubr.bf16.mxu0 %v2615_v36  ;;  %v2609_v43 = vadd.f32 %v3924_v32, %v4764_v20 }
 0x98e   : > { %v3926_v40 = vpop.eup %3925  ;;  %2787 = vmatmul.mubr.bf16.gmra.mxu0 %v2614_v39  ;;  %v3936_v39 = vld [vmem:[%s4632_s29 + $0x28] sm:$0xff] }
 0x98f   : > { %v3928_v41 = vpop.eup %3927  ;;  %v2610_v19 = vadd.f32 %v3926_v40, %v4761_v18 }
 0x990   : > { %v3930_v42 = vpop.eup %3929  ;;  %v2608_v37 = vadd.f32 %v3928_v41, %v4770_v44 }
 0x991   : > { %v2611_v12 = vadd.f32 %v3930_v42, %v4767_v21 }
 0x992   : > { %v2616_v14 = vpack.c.bf16 %v2610_v19, %v2608_v37 }
 0x993   : > { %v2617_v45 = vpack.c.bf16 %v2611_v12, %v2609_v43 }
 0x995   : > { %2794 = vmatprep.mubr.bf16.mxu0 %v2617_v45 }
 0x996   : > { %2795 = vmatmul.mubr.bf16.gmra.mxu0 %v2616_v14 }
 0xa46   : > { %v3340_v38 = vpop.f32.mrf.mxu0 }
 0xa48   : > { %v3341_v46 = vpop.f32.mrf.mxu0 }
 0xa49   : > { %v3342_v55 = vadd.f32 %v3341_v46, %v3340_v38 }
 0xa4a   : > { %v3343_v25 = vpop.f32.mrf.mxu0 }
 0xa4c   : > { %v3344_v47 = vpop.f32.mrf.mxu0 }
 0xa4d   : > { %v3345_v54 = vadd.f32 %v3344_v47, %v3343_v25 }
 0xa4e   : > { %v3346_v24 = vpop.f32.mrf.mxu0 }
 0xa4f   : > { %v2809_v56 = vpack.c.bf16 %v3345_v54, %v3342_v55 }
 0xa50   : > { %v3347_v48 = vpop.f32.mrf.mxu0 }
 0xa51   : > { %v3348_v53 = vadd.f32 %v3347_v48, %v3346_v24 }
 0xa52   : > { %v3349_v49 = vpop.f32.mrf.mxu0 }
 0xa54   : > { %v3350_v26 = vpop.f32.mrf.mxu0 }
 0xa55   : > { %v3351_v52 = vadd.f32 %v3350_v26, %v3349_v49 }
 0xa56   : > { %v3352_v50 = vpop.f32.mrf.mxu0 }
 0xa57   : > { %v2810_v29 = vpack.c.bf16 %v3351_v52, %v3348_v53 }
 0xa58   : > { %v3353_v18 = vpop.f32.mrf.mxu0 }
 0xa59   : > { %v3354_v27 = vadd.f32 %v3353_v18, %v3352_v50 }
 0xa5a   : > { %v3355_v51 = vpop.f32.mrf.mxu0 }
 0xa5c   : > { %v3356_v20 = vpop.f32.mrf.mxu0 }
 0xa5d   : > { %v3357_v21 = vadd.f32 %v3356_v20, %v3355_v51 }
 0xa5f   : > { %v2811_v44 = vpack.c.bf16 %v3357_v21, %v3354_v27 }
 0xa61   : > { %3383 = vmatpush3.bf16.msra.mxu1 %v2811_v44 }
 0xa62   : > { %3384 = vmatprep.subr.bf16.mxu1 %v4328_v0 }
 0xa65   : > { %3385 = vmatpush3.bf16.msra.mxu1 %v2810_v29 }
 0xa66   : > { %3386 = vmatprep.subr.bf16.mxu1 %v4328_v0 }
 0xa69   : > { %3387 = vmatpush3.bf16.msra.mxu1 %v2809_v56 }
 0xa6c   : > { %3389 = vmatmul.mubr.msk.bf16.vlgmr.msra.gmra.mxu1 %vm607_vm1, %v3808_v57 }
 0xa6d   : > { %3392 = vmatprep.mubr.msk.bf16.mxu1 %vm4329_vm0, %v4328_v0 }
 0xa74   : > { %3393 = vmatmul.mubr.msk.bf16.gmra.mxu1 %vm607_vm1, %v3809_v58 }
 0xa75   : > { %3396 = vmatprep.mubr.msk.bf16.mxu1 %vm4329_vm0, %v4328_v0 }
 0xa7c   : > { %3397 = vmatmul.mubr.msk.bf16.gmra.mxu1 %vm607_vm1, %v3810_v59 }
 0xb2c   : > { %v2877_v61 = vpop.f32.mrf.mxu1 }
 0xb2d   : > { %v2878_v62 = vadd.f32 %v3308_v60, %v2877_v61 }
 0xb2e   : > { %v3390_v63 = vpop.f32.mrf.mxu1 }
 0xb2f   : > { %v2900_v2 = vadd.f32 %v3931_v1, %v2878_v62 }
 0xb30   : > { %v2880_v3 = vpop.f32.mrf.mxu1 }
 0xb31   : > { %2906 = vst [vmem:[%s4817_s28] sm:$0xff] %v2900_v2  ;;  %v2881_v0 = vadd.f32 %v3308_v60, %v2880_v3 }
 0xb32   : > { %v3391_v4 = vpop.f32.mrf.mxu1 }
 0xb33   : > { %v2901_v7 = vadd.f32 %v3932_v5, %v2881_v0 }
 0xb34   : > { %v2885_v8 = vpop.f32.mrf.mxu1 }
 0xb35   : > { %2907 = vst [vmem:[%s4817_s28 + $0x8] sm:$0xff] %v2901_v7  ;;  %v2886_v10 = vadd.f32 %v3308_v60, %v2885_v8 }
 0xb36   : > { %v3394_v11 = vpop.f32.mrf.mxu1 }
 0xb37   : > { %v2902_v15 = vadd.f32 %v3933_v13, %v2886_v10 }
 0xb38   : > { %v2888_v16 = vpop.f32.mrf.mxu1 }
 0xb39   : > { %2908 = vst [vmem:[%s4817_s28 + $0x10] sm:$0xff] %v2902_v15  ;;  %v2889_v17 = vadd.f32 %v3308_v60, %v2888_v16 }
 0xb3a   : > { %v3395_v22 = vpop.f32.mrf.mxu1 }
 0xb3b   : > { %v2903_v33 = vadd.f32 %v3934_v28, %v2889_v17 }
 0xb3c   : > { %v2893_v9 = vpop.f32.mrf.mxu1 }
 0xb3d   : > { %2909 = vst [vmem:[%s4817_s28 + $0x18] sm:$0xff] %v2903_v33  ;;  %v2894_v34 = vadd.f32 %v3308_v60, %v2893_v9 }
 0xb3e   : > { %v3398_v35 = vpop.f32.mrf.mxu1 }
 0xb3f   : > { %v2904_v6 = vadd.f32 %v3935_v23, %v2894_v34 }
 0xb40   : > { %v2896_v30 = vpop.f32.mrf.mxu1 }
 0xb41   : > { %2910 = vst [vmem:[%s4817_s28 + $0x20] sm:$0xff] %v2904_v6  ;;  %v2897_v31 = vadd.f32 %v3308_v60, %v2896_v30 }
 0xb42   : > { %v3399_v36 = vpop.f32.mrf.mxu1 }
 0xb43   : > { %v2905_v32 = vadd.f32 %v3936_v39, %v2897_v31 }
 0xb45   : > { %2911 = vst [vmem:[%s4817_s28 + $0x28] sm:$0xff] %v2905_v32 }
 0xb46   : > { %4238 = shalt.err (!%p4235_p10)
}
 0xb47   : > { %s4239_s20 = scalar_lea.hbm %s4835_s19, 768  ;;  %s4243_s3 = scalar_lea.hbm %s4892_s12, 1536 }
 0xb48   : > { %p4240_p12 = scmp.ne.s32.totalorder %s4835_s19, %s4239_s20  ;;  %p4244_p6 = scmp.lt.s32.totalorder %s4835_s19, %s4892_s12 }
 0xb49   : > { %p4245_p5 = scmp.lt.s32.totalorder %s4243_s3, %s4239_s20 }
 0xb4a   : > { %p4241_p0 = pnand %p4240_p12, %p4939_p13 }
 0xb4b   : > { %p4246_p4 = por %p4245_p5, %p4244_p6 }
 0xb4c   : > { %p4242_p2 = pneg %p4241_p0 }
 0xb4e   : > { %p4247_p7 = pnand %p4246_p4, %p4242_p2 }
 0xb50   : > { %4250 = shalt.err (!%p4247_p7)
}
 0xb51   : > { %s4332_s25 = smov 128   ;;  %s4333_s13 = smov 256  }
 0xb52   : > { %s4334_s2 = smov 8  }
 0xb53   : > { %3444 = dma.vmem_to_hbm [thread:$0]  (%p4939_p13), %s4829_s18, 768, %s4835_s19, %s2913_s1, %s4332_s25, %s4333_s13, %s4334_s2  }
 0xb54 PF: > { %s2940_s6 = sand.u32 1, %s4297_s21   ;;  %p4940_p1 = scmp.ne.s32.totalorder %s4923_s26, 0 }
 0xb55   : > { %p4941_p3 = scmp.ge.s32.totalorder %s4309_s24, 2  ;;  %s2941_s27 = scalar_lea.sflag [#allocation4], %s2940_s6 }
 0xb57   : > { %p3482_p8 = pnand %p4941_p3, %p4940_p1 }
 0xb59   : > { %p3483_p9 = pneg %p3482_p8 }
 0xb5b   : > { %4292 = dma.done.wait (%p3483_p9), %s2941_s27, 768  }
 0xb5c   : > { %4294 = vsyncadd (%p3483_p9), %s2941_s27, 4294966528  ;;  %p30_p11 = scmp.ge.s32.totalorder %s4557_s16, 4   ;;  %s4942_s21 = smov %s4301_s22 }
 0xb5d   : > { %s4943_s22 = smov %s4305_s23  ;;  %s4944_s23 = smov %s4568_s14 }
 0xb5e   : > { %s4945_s24 = smov %s4557_s16  ;;  %32 = sbr.rel (!%p30_p11) target bundleno = 18 (0x12), region = 165 }
 0xb63   :  { %2946 = vsyncpa [#allocation3], 1 }
 0xb64   :  { %2948 = vsyncpa [#allocation3 + $0x1], 1 }
 0xb65   :  { %2949 = vsyncpa [#allocation6], 1 }
 0xb66   :  { %2950 = vsyncpa [#allocation9], 1 }
 0xb67   :  { %2951 = vsyncpa [#allocation12], 1 }
 0xb68   :  { %2952 = vsyncpa [#allocation15], 1 }
 0xb69   :  { %2953 = vsyncpa [#allocation18], 1 }
 0xb6a   :  { %2954 = vsyncpa [#allocation4], 1 }
 0xb6b   :  { %2956 = vsyncpa [#allocation4 + $0x1], 1 }

</bundles_post_ra>
